<compile_context>
chip_gen: v5e
topology: v5e:2x2
jax: 0.10.0
libtpu: 0.0.40
codegen_flags: <defaults>
</compile_context>

<pallas_src>
import jax
import jax.numpy as jnp
from jax import lax
from jax.experimental import pallas as pl
from jax.experimental.pallas import tpu as pltpu

IN_FEATURES = 1000
IN_FEATURES_PADDED = 1024            # pad fc1's K to a lane multiple
FC_SIZES = (256, 128, 256, 128, 256, 128, 8)
OUT_FEATURES = FC_SIZES[-1]          # 8
OUT_FEATURES_PADDED = 128            # lane-dense output store, sliced in wrapper

# padded per-layer feature sizes actually seen by the kernel
_PADDED_DIMS = (IN_FEATURES_PADDED, 256, 128, 256, 128, 256, 128, OUT_FEATURES_PADDED)

_TINY_BATCH = 256                    # <= this: a single tile, no grid overhead
_MAX_BLOCK_B = 4096                  # v7x 64 MiB VMEM cap
_VMEM_LIMIT_BYTES = 48 << 20         # > v5e/v6e scoped defaults, < v7x physical

# bf16 weights + f32 biases, padded, staged once into VMEM (~0.9 MiB total)
_WEIGHT_BYTES = sum(
    2 * _PADDED_DIMS[i] * _PADDED_DIMS[i + 1] + 4 * _PADDED_DIMS[i + 1]
    for i in range(len(_PADDED_DIMS) - 1)
)


def _round_up(x, m):
    return (x + m - 1) // m * m


def _mlp_kernel(x_ref,
                w1_ref, b1_ref, w2_ref, b2_ref, w3_ref, b3_ref,
                w4_ref, b4_ref, w5_ref, b5_ref, w6_ref, b6_ref,
                w7_ref, b7_ref,
                o_ref):
    """Fused 7-layer MLP (eval mode): relu(x@W+b) x6 (dropout = identity),
    then sigmoid(x@W7+b7).  MXU operands and inter-layer activations are bf16,
    accumulation / bias add / relu / sigmoid are f32."""

    def hidden(h, w_ref, b_ref):
        acc = jnp.dot(h, w_ref[...],
                      preferred_element_type=jnp.float32) + b_ref[...]
        # bf16 carry: halves spill traffic; identical math to casting at the
        # next layer's MXU operand (relu commutes with the rounding).
        return jnp.maximum(acc, 0.0).astype(jnp.bfloat16)

    h = x_ref[...]                       # (bb, 1024) bf16
    h = hidden(h, w1_ref, b1_ref)        # fc1 + relu  (+ d1: no-op in eval)
    h = hidden(h, w2_ref, b2_ref)        # fc2 + relu  (+ d2: no-op in eval)
    h = hidden(h, w3_ref, b3_ref)        # fc3 + relu  (+ d3: no-op in eval)
    h = hidden(h, w4_ref, b4_ref)        # fc4 + relu  (+ d4: no-op in eval)
    h = hidden(h, w5_ref, b5_ref)        # fc5 + relu  (+ d5: no-op in eval)
    h = hidden(h, w6_ref, b6_ref)        # fc6 + relu
    acc = jnp.dot(h, w7_ref[...],
                  preferred_element_type=jnp.float32) + b7_ref[...]
    o_ref[...] = jax.nn.sigmoid(acc).astype(o_ref.dtype)   # eval-mode output
    # TODO(synk): training-mode path (dropout masks, no sigmoid) not implemented.


def prepare_params(params):
    """One-time preprocessing: pad fc1 rows 1000->1024 and fc7 cols 8->128,
    cast weights to bf16, biases to f32 (1, out).  Call ONCE and reuse the
    result across forwards — this avoids re-running ~2.7 MB of pad/cast HBM
    traffic (plus 14 extra XLA ops) on every call.

    Zero padding leaves the math exactly equivalent on the real
    1000-in / 8-out slice."""
    flat = []
    n = len(params)
    for idx, (w, b) in enumerate(params):
        if idx == 0:
            wpad = jnp.zeros((IN_FEATURES_PADDED, w.shape[1]), w.dtype)
            wpad = wpad.at[:IN_FEATURES, :].set(w)
        elif idx == n - 1:
            wpad = jnp.zeros((w.shape[0], OUT_FEATURES_PADDED), w.dtype)
            wpad = wpad.at[:, :OUT_FEATURES].set(w)
        else:
            wpad = w
        wcast = wpad.astype(jnp.bfloat16)

        if idx == n - 1:
            bpad = jnp.zeros((1, OUT_FEATURES_PADDED), jnp.float32)
            bpad = bpad.at[:, :OUT_FEATURES].set(b.astype(jnp.float32))
        else:
            bpad = b.astype(jnp.float32)

        flat.extend([wcast, bpad])
    return tuple(jax.device_put(p) for p in flat)


def _pick_batch_tile(B, block_b):
    """Batch tile bb (multiple of 8) and padded batch Bp (multiple of bb)."""
    block_b = _round_up(min(max(block_b, 8), _MAX_BLOCK_B), 8)
    B8 = _round_up(B, 8)
    if B8 <= _TINY_BATCH:
        bb = B8                              # single tile: no per-step overhead
    elif B8 <= 2 * block_b:
        bb = _round_up(-(-B8 // 2), 8)       # exactly 2 tiles -> both TCs (v7x)
    else:
        bb = block_b                         # many tiles, amortized step cost
    Bp = _round_up(B8, bb)
    return bb, Bp


def seven_layer_classification_forward(x, flat_params, *, block_b=2048):
    """x: (B, 1000) float32.  flat_params: output of prepare_params()."""
    B, F = x.shape
    assert F == IN_FEATURES

    bb, Bp = _pick_batch_tile(B, block_b)

    # Single fused pad of an already-bf16 x (jit fuses the convert+pad).
    xp = lax.pad(x.astype(jnp.bfloat16), jnp.array(0, jnp.bfloat16),
                 ((0, Bp - B, 0), (0, IN_FEATURES_PADDED - F, 0)))

    # Grid-invariant weight/bias blocks: same (0, 0) block every grid step, so
    # the pipeline stages them into VMEM once (~0.9 MiB total).
    param_specs = [pl.BlockSpec(p.shape, lambda i: (0, 0)) for p in flat_params]
    in_specs = [pl.BlockSpec((bb, IN_FEATURES_PADDED), lambda i: (i, 0))] + param_specs
    out_specs = pl.BlockSpec((bb, OUT_FEATURES_PADDED), lambda i: (i, 0))

    # Advisory cost estimate (padded problem sizes).
    flops = 2 * Bp * sum(_PADDED_DIMS[i] * _PADDED_DIMS[i + 1]
                         for i in range(len(_PADDED_DIMS) - 1))
    transcendentals = Bp * OUT_FEATURES_PADDED
    bytes_accessed = (Bp * IN_FEATURES_PADDED * 2            # x (bf16)
                      + _WEIGHT_BYTES
                      + Bp * OUT_FEATURES_PADDED * 2)        # out (bf16)

    out_padded = pl.pallas_call(
        _mlp_kernel,
        out_shape=jax.ShapeDtypeStruct((Bp, OUT_FEATURES_PADDED), jnp.bfloat16),
        grid_spec=pltpu.PrefetchScalarGridSpec(
            num_scalar_prefetch=0,
            grid=(Bp // bb,),
            in_specs=in_specs,
            out_specs=out_specs,
        ),
        compiler_params=pltpu.CompilerParams(
            dimension_semantics=("parallel",),
            vmem_limit_bytes=_VMEM_LIMIT_BYTES,
        ),
        cost_estimate=pl.CostEstimate(
            flops=int(flops),
            transcendentals=int(transcendentals),
            bytes_accessed=int(bytes_accessed),
        ),
    )(xp, *flat_params)

    return out_padded[:B, :OUT_FEATURES].astype(jnp.float32)


def init_params(key):
    """Deterministic synthetic parameters matching nn.Linear shapes (f32)."""
    params = []
    in_dim = IN_FEATURES
    for out_dim in FC_SIZES:
        key, kw, kb = jax.random.split(key, 3)
        bound = 1.0 / jnp.sqrt(in_dim)  # PyTorch default Linear init range
        w = jax.random.uniform(kw, (in_dim, out_dim), jnp.float32, -bound, bound)
        b = jax.random.uniform(kb, (1, out_dim), jnp.float32, -bound, bound)
        params.append((w, b))
        in_dim = out_dim
    return params


def reference_forward(x, params):
    """Pure-JAX f32 reference (eval mode)."""
    h = x
    for idx, (w, b) in enumerate(params):
        h = h @ w + b
        if idx < len(params) - 1:
            h = jnp.maximum(h, 0.0)
    return jax.nn.sigmoid(h)


if __name__ == "__main__":
    key = jax.random.PRNGKey(0)
    key, kx = jax.random.split(key)

    B = 16  # small demo batch -> single (16, 1024) tile, no grid overhead
    x = jax.random.normal(kx, (B, IN_FEATURES), jnp.float32)
    params = init_params(key)

    # One-time param preprocessing, reused across every forward.
    flat_params = prepare_params(params)

    forward = jax.jit(seven_layer_classification_forward)
    out = forward(x, flat_params)
    out = jax.block_until_ready(out)

    ref = reference_forward(x, params)
    assert out.shape == (B, OUT_FEATURES)
    max_err = float(jnp.max(jnp.abs(out - ref)))
    # bf16 weights/operands/activations + bf16 output store -> loosened tolerance
    assert max_err < 2e-2, f"mismatch vs reference: max abs err {max_err}"

    print("KERNEL_OK")
</pallas_src>

<mosaic_0001>
module attributes {stable_mosaic.version = 11 : i64} {
  func.func @_mlp_kernel(%arg0: i32, %arg1: memref<16x1024xbf16, #tpu.memory_space<vmem>>, %arg2: memref<1024x256xbf16, #tpu.memory_space<vmem>>, %arg3: memref<1x256xf32, #tpu.memory_space<vmem>>, %arg4: memref<256x128xbf16, #tpu.memory_space<vmem>>, %arg5: memref<1x128xf32, #tpu.memory_space<vmem>>, %arg6: memref<128x256xbf16, #tpu.memory_space<vmem>>, %arg7: memref<1x256xf32, #tpu.memory_space<vmem>>, %arg8: memref<256x128xbf16, #tpu.memory_space<vmem>>, %arg9: memref<1x128xf32, #tpu.memory_space<vmem>>, %arg10: memref<128x256xbf16, #tpu.memory_space<vmem>>, %arg11: memref<1x256xf32, #tpu.memory_space<vmem>>, %arg12: memref<256x128xbf16, #tpu.memory_space<vmem>>, %arg13: memref<1x128xf32, #tpu.memory_space<vmem>>, %arg14: memref<128x128xbf16, #tpu.memory_space<vmem>>, %arg15: memref<1x128xf32, #tpu.memory_space<vmem>>, %arg16: memref<16x128xbf16, #tpu.memory_space<vmem>>) attributes {dimension_semantics = [#tpu.dimension_semantics<parallel>], iteration_bounds = array<i64: 1>, scalar_prefetch = 0 : i64, scratch_operands = 0 : i64, tpu.core_type = #tpu.core_type<tc>, window_params = [{transform_indices = @transform_0, window_bounds = array<i64: 16, 1024>}, {pipeline_mode = #tpu.pipeline_mode<synchronous>, transform_indices = @transform_1, window_bounds = array<i64: 1024, 256>}, {pipeline_mode = #tpu.pipeline_mode<synchronous>, transform_indices = @transform_2, window_bounds = array<i64: 1, 256>}, {pipeline_mode = #tpu.pipeline_mode<synchronous>, transform_indices = @transform_3, window_bounds = array<i64: 256, 128>}, {pipeline_mode = #tpu.pipeline_mode<synchronous>, transform_indices = @transform_4, window_bounds = array<i64: 1, 128>}, {pipeline_mode = #tpu.pipeline_mode<synchronous>, transform_indices = @transform_5, window_bounds = array<i64: 128, 256>}, {pipeline_mode = #tpu.pipeline_mode<synchronous>, transform_indices = @transform_6, window_bounds = array<i64: 1, 256>}, {pipeline_mode = #tpu.pipeline_mode<synchronous>, transform_indices = @transform_7, window_bounds = array<i64: 256, 128>}, {pipeline_mode = #tpu.pipeline_mode<synchronous>, transform_indices = @transform_8, window_bounds = array<i64: 1, 128>}, {pipeline_mode = #tpu.pipeline_mode<synchronous>, transform_indices = @transform_9, window_bounds = array<i64: 128, 256>}, {pipeline_mode = #tpu.pipeline_mode<synchronous>, transform_indices = @transform_10, window_bounds = array<i64: 1, 256>}, {pipeline_mode = #tpu.pipeline_mode<synchronous>, transform_indices = @transform_11, window_bounds = array<i64: 256, 128>}, {pipeline_mode = #tpu.pipeline_mode<synchronous>, transform_indices = @transform_12, window_bounds = array<i64: 1, 128>}, {pipeline_mode = #tpu.pipeline_mode<synchronous>, transform_indices = @transform_13, window_bounds = array<i64: 128, 128>}, {pipeline_mode = #tpu.pipeline_mode<synchronous>, transform_indices = @transform_14, window_bounds = array<i64: 1, 128>}, {transform_indices = @transform_15, window_bounds = array<i64: 16, 128>}]} {
    %c0 = arith.constant 0 : index
    %c0_0 = arith.constant 0 : index
    %0 = vector.load %arg1[%c0, %c0_0] : memref<16x1024xbf16, #tpu.memory_space<vmem>>, vector<16x1024xbf16>
    %c0_1 = arith.constant 0 : index
    %c0_2 = arith.constant 0 : index
    %1 = vector.load %arg2[%c0_1, %c0_2] : memref<1024x256xbf16, #tpu.memory_space<vmem>>, vector<1024x256xbf16>
    %cst = arith.constant dense<0.000000e+00> : vector<16x256xf32>
    %2 = tpu.matmul %0, %1, %cst {dimension_numbers = #tpu.dot_dimension_numbers<[1], [0], [0], [1], [0, 0, 1, 1], [], []>} : vector<16x1024xbf16>, vector<1024x256xbf16>, vector<16x256xf32> -> vector<16x256xf32>
    %c0_3 = arith.constant 0 : index
    %c0_4 = arith.constant 0 : index
    %3 = vector.load %arg3[%c0_3, %c0_4] : memref<1x256xf32, #tpu.memory_space<vmem>>, vector<1x256xf32>
    %4 = vector.broadcast %3 : vector<1x256xf32> to vector<16x256xf32>
    %5 = arith.addf %2, %4 : vector<16x256xf32>
    %cst_5 = arith.constant 0.000000e+00 : f32
    %6 = vector.broadcast %cst_5 : f32 to vector<16x256xf32>
    %7 = arith.maximumf %5, %6 : vector<16x256xf32>
    %8 = arith.truncf %7 : vector<16x256xf32> to vector<16x256xbf16>
    %c0_6 = arith.constant 0 : index
    %c0_7 = arith.constant 0 : index
    %9 = vector.load %arg4[%c0_6, %c0_7] : memref<256x128xbf16, #tpu.memory_space<vmem>>, vector<256x128xbf16>
    %cst_8 = arith.constant dense<0.000000e+00> : vector<16x128xf32>
    %10 = tpu.matmul %8, %9, %cst_8 {dimension_numbers = #tpu.dot_dimension_numbers<[1], [0], [0], [1], [0, 0, 1, 1], [], []>} : vector<16x256xbf16>, vector<256x128xbf16>, vector<16x128xf32> -> vector<16x128xf32>
    %c0_9 = arith.constant 0 : index
    %c0_10 = arith.constant 0 : index
    %11 = vector.load %arg5[%c0_9, %c0_10] : memref<1x128xf32, #tpu.memory_space<vmem>>, vector<1x128xf32>
    %12 = vector.broadcast %11 : vector<1x128xf32> to vector<16x128xf32>
    %13 = arith.addf %10, %12 : vector<16x128xf32>
    %cst_11 = arith.constant 0.000000e+00 : f32
    %14 = vector.broadcast %cst_11 : f32 to vector<16x128xf32>
    %15 = arith.maximumf %13, %14 : vector<16x128xf32>
    %16 = arith.truncf %15 : vector<16x128xf32> to vector<16x128xbf16>
    %c0_12 = arith.constant 0 : index
    %c0_13 = arith.constant 0 : index
    %17 = vector.load %arg6[%c0_12, %c0_13] : memref<128x256xbf16, #tpu.memory_space<vmem>>, vector<128x256xbf16>
    %cst_14 = arith.constant dense<0.000000e+00> : vector<16x256xf32>
    %18 = tpu.matmul %16, %17, %cst_14 {dimension_numbers = #tpu.dot_dimension_numbers<[1], [0], [0], [1], [0, 0, 1, 1], [], []>} : vector<16x128xbf16>, vector<128x256xbf16>, vector<16x256xf32> -> vector<16x256xf32>
    %c0_15 = arith.constant 0 : index
    %c0_16 = arith.constant 0 : index
    %19 = vector.load %arg7[%c0_15, %c0_16] : memref<1x256xf32, #tpu.memory_space<vmem>>, vector<1x256xf32>
    %20 = vector.broadcast %19 : vector<1x256xf32> to vector<16x256xf32>
    %21 = arith.addf %18, %20 : vector<16x256xf32>
    %cst_17 = arith.constant 0.000000e+00 : f32
    %22 = vector.broadcast %cst_17 : f32 to vector<16x256xf32>
    %23 = arith.maximumf %21, %22 : vector<16x256xf32>
    %24 = arith.truncf %23 : vector<16x256xf32> to vector<16x256xbf16>
    %c0_18 = arith.constant 0 : index
    %c0_19 = arith.constant 0 : index
    %25 = vector.load %arg8[%c0_18, %c0_19] : memref<256x128xbf16, #tpu.memory_space<vmem>>, vector<256x128xbf16>
    %cst_20 = arith.constant dense<0.000000e+00> : vector<16x128xf32>
    %26 = tpu.matmul %24, %25, %cst_20 {dimension_numbers = #tpu.dot_dimension_numbers<[1], [0], [0], [1], [0, 0, 1, 1], [], []>} : vector<16x256xbf16>, vector<256x128xbf16>, vector<16x128xf32> -> vector<16x128xf32>
    %c0_21 = arith.constant 0 : index
    %c0_22 = arith.constant 0 : index
    %27 = vector.load %arg9[%c0_21, %c0_22] : memref<1x128xf32, #tpu.memory_space<vmem>>, vector<1x128xf32>
    %28 = vector.broadcast %27 : vector<1x128xf32> to vector<16x128xf32>
    %29 = arith.addf %26, %28 : vector<16x128xf32>
    %cst_23 = arith.constant 0.000000e+00 : f32
    %30 = vector.broadcast %cst_23 : f32 to vector<16x128xf32>
    %31 = arith.maximumf %29, %30 : vector<16x128xf32>
    %32 = arith.truncf %31 : vector<16x128xf32> to vector<16x128xbf16>
    %c0_24 = arith.constant 0 : index
    %c0_25 = arith.constant 0 : index
    %33 = vector.load %arg10[%c0_24, %c0_25] : memref<128x256xbf16, #tpu.memory_space<vmem>>, vector<128x256xbf16>
    %cst_26 = arith.constant dense<0.000000e+00> : vector<16x256xf32>
    %34 = tpu.matmul %32, %33, %cst_26 {dimension_numbers = #tpu.dot_dimension_numbers<[1], [0], [0], [1], [0, 0, 1, 1], [], []>} : vector<16x128xbf16>, vector<128x256xbf16>, vector<16x256xf32> -> vector<16x256xf32>
    %c0_27 = arith.constant 0 : index
    %c0_28 = arith.constant 0 : index
    %35 = vector.load %arg11[%c0_27, %c0_28] : memref<1x256xf32, #tpu.memory_space<vmem>>, vector<1x256xf32>
    %36 = vector.broadcast %35 : vector<1x256xf32> to vector<16x256xf32>
    %37 = arith.addf %34, %36 : vector<16x256xf32>
    %cst_29 = arith.constant 0.000000e+00 : f32
    %38 = vector.broadcast %cst_29 : f32 to vector<16x256xf32>
    %39 = arith.maximumf %37, %38 : vector<16x256xf32>
    %40 = arith.truncf %39 : vector<16x256xf32> to vector<16x256xbf16>
    %c0_30 = arith.constant 0 : index
    %c0_31 = arith.constant 0 : index
    %41 = vector.load %arg12[%c0_30, %c0_31] : memref<256x128xbf16, #tpu.memory_space<vmem>>, vector<256x128xbf16>
    %cst_32 = arith.constant dense<0.000000e+00> : vector<16x128xf32>
    %42 = tpu.matmul %40, %41, %cst_32 {dimension_numbers = #tpu.dot_dimension_numbers<[1], [0], [0], [1], [0, 0, 1, 1], [], []>} : vector<16x256xbf16>, vector<256x128xbf16>, vector<16x128xf32> -> vector<16x128xf32>
    %c0_33 = arith.constant 0 : index
    %c0_34 = arith.constant 0 : index
    %43 = vector.load %arg13[%c0_33, %c0_34] : memref<1x128xf32, #tpu.memory_space<vmem>>, vector<1x128xf32>
    %44 = vector.broadcast %43 : vector<1x128xf32> to vector<16x128xf32>
    %45 = arith.addf %42, %44 : vector<16x128xf32>
    %cst_35 = arith.constant 0.000000e+00 : f32
    %46 = vector.broadcast %cst_35 : f32 to vector<16x128xf32>
    %47 = arith.maximumf %45, %46 : vector<16x128xf32>
    %48 = arith.truncf %47 : vector<16x128xf32> to vector<16x128xbf16>
    %c0_36 = arith.constant 0 : index
    %c0_37 = arith.constant 0 : index
    %49 = vector.load %arg14[%c0_36, %c0_37] : memref<128x128xbf16, #tpu.memory_space<vmem>>, vector<128x128xbf16>
    %cst_38 = arith.constant dense<0.000000e+00> : vector<16x128xf32>
    %50 = tpu.matmul %48, %49, %cst_38 {dimension_numbers = #tpu.dot_dimension_numbers<[1], [0], [0], [1], [0, 0, 1, 1], [], []>} : vector<16x128xbf16>, vector<128x128xbf16>, vector<16x128xf32> -> vector<16x128xf32>
    %c0_39 = arith.constant 0 : index
    %c0_40 = arith.constant 0 : index
    %51 = vector.load %arg15[%c0_39, %c0_40] : memref<1x128xf32, #tpu.memory_space<vmem>>, vector<1x128xf32>
    %52 = vector.broadcast %51 : vector<1x128xf32> to vector<16x128xf32>
    %53 = arith.addf %50, %52 : vector<16x128xf32>
    %54 = arith.negf %53 : vector<16x128xf32>
    %55 = math.exp %54 : vector<16x128xf32>
    %cst_41 = arith.constant 1.000000e+00 : f32
    %56 = vector.broadcast %cst_41 : f32 to vector<16x128xf32>
    %57 = arith.addf %56, %55 : vector<16x128xf32>
    %58 = arith.divf %56, %57 : vector<16x128xf32>
    %59 = arith.truncf %58 : vector<16x128xf32> to vector<16x128xbf16>
    %c0_42 = arith.constant 0 : index
    %c0_43 = arith.constant 0 : index
    %60 = vector.load %arg16[%c0_42, %c0_43] : memref<16x128xbf16, #tpu.memory_space<vmem>>, vector<16x128xbf16>
    tpu.vector_store %arg16[%c0_42, %c0_43], %59 {strides = array<i32>} : memref<16x128xbf16, #tpu.memory_space<vmem>>, vector<16x128xbf16>,
    return
  }
  func.func @transform_0(%arg0: i32) -> (i32, i32) {
    %c0_i32 = arith.constant 0 : i32
    %c0_i32_0 = arith.constant 0 : i32
    return %arg0, %c0_i32 : i32, i32
  }
  func.func @transform_1(%arg0: i32) -> (i32, i32) {
    %c0_i32 = arith.constant 0 : i32
    %c0_i32_0 = arith.constant 0 : i32
    %c0_i32_1 = arith.constant 0 : i32
    return %c0_i32, %c0_i32_0 : i32, i32
  }
  func.func @transform_2(%arg0: i32) -> (i32, i32) {
    %c0_i32 = arith.constant 0 : i32
    %c0_i32_0 = arith.constant 0 : i32
    %c0_i32_1 = arith.constant 0 : i32
    return %c0_i32, %c0_i32_0 : i32, i32
  }
  func.func @transform_3(%arg0: i32) -> (i32, i32) {
    %c0_i32 = arith.constant 0 : i32
    %c0_i32_0 = arith.constant 0 : i32
    %c0_i32_1 = arith.constant 0 : i32
    return %c0_i32, %c0_i32_0 : i32, i32
  }
  func.func @transform_4(%arg0: i32) -> (i32, i32) {
    %c0_i32 = arith.constant 0 : i32
    %c0_i32_0 = arith.constant 0 : i32
    %c0_i32_1 = arith.constant 0 : i32
    return %c0_i32, %c0_i32_0 : i32, i32
  }
  func.func @transform_5(%arg0: i32) -> (i32, i32) {
    %c0_i32 = arith.constant 0 : i32
    %c0_i32_0 = arith.constant 0 : i32
    %c0_i32_1 = arith.constant 0 : i32
    return %c0_i32, %c0_i32_0 : i32, i32
  }
  func.func @transform_6(%arg0: i32) -> (i32, i32) {
    %c0_i32 = arith.constant 0 : i32
    %c0_i32_0 = arith.constant 0 : i32
    %c0_i32_1 = arith.constant 0 : i32
    return %c0_i32, %c0_i32_0 : i32, i32
  }
  func.func @transform_7(%arg0: i32) -> (i32, i32) {
    %c0_i32 = arith.constant 0 : i32
    %c0_i32_0 = arith.constant 0 : i32
    %c0_i32_1 = arith.constant 0 : i32
    return %c0_i32, %c0_i32_0 : i32, i32
  }
  func.func @transform_8(%arg0: i32) -> (i32, i32) {
    %c0_i32 = arith.constant 0 : i32
    %c0_i32_0 = arith.constant 0 : i32
    %c0_i32_1 = arith.constant 0 : i32
    return %c0_i32, %c0_i32_0 : i32, i32
  }
  func.func @transform_9(%arg0: i32) -> (i32, i32) {
    %c0_i32 = arith.constant 0 : i32
    %c0_i32_0 = arith.constant 0 : i32
    %c0_i32_1 = arith.constant 0 : i32
    return %c0_i32, %c0_i32_0 : i32, i32
  }
  func.func @transform_10(%arg0: i32) -> (i32, i32) {
    %c0_i32 = arith.constant 0 : i32
    %c0_i32_0 = arith.constant 0 : i32
    %c0_i32_1 = arith.constant 0 : i32
    return %c0_i32, %c0_i32_0 : i32, i32
  }
  func.func @transform_11(%arg0: i32) -> (i32, i32) {
    %c0_i32 = arith.constant 0 : i32
    %c0_i32_0 = arith.constant 0 : i32
    %c0_i32_1 = arith.constant 0 : i32
    return %c0_i32, %c0_i32_0 : i32, i32
  }
  func.func @transform_12(%arg0: i32) -> (i32, i32) {
    %c0_i32 = arith.constant 0 : i32
    %c0_i32_0 = arith.constant 0 : i32
    %c0_i32_1 = arith.constant 0 : i32
    return %c0_i32, %c0_i32_0 : i32, i32
  }
  func.func @transform_13(%arg0: i32) -> (i32, i32) {
    %c0_i32 = arith.constant 0 : i32
    %c0_i32_0 = arith.constant 0 : i32
    %c0_i32_1 = arith.constant 0 : i32
    return %c0_i32, %c0_i32_0 : i32, i32
  }
  func.func @transform_14(%arg0: i32) -> (i32, i32) {
    %c0_i32 = arith.constant 0 : i32
    %c0_i32_0 = arith.constant 0 : i32
    %c0_i32_1 = arith.constant 0 : i32
    return %c0_i32, %c0_i32_0 : i32, i32
  }
  func.func @transform_15(%arg0: i32) -> (i32, i32) {
    %c0_i32 = arith.constant 0 : i32
    %c0_i32_0 = arith.constant 0 : i32
    return %arg0, %c0_i32 : i32, i32
  }
}

</mosaic_0001>

<bundles_post_ra>
// kernel: seven_layer_classification_forward.1
= control target key start
LH: loop header
LB: loop body
LE: loop exit
PB: predicated region body
PF: predicated region fallthrough
CT: control target
= control target key end

     0   :  { %20 = vsyncpa [#allocation3], 0  ;;  %s3770_s0 = inlined_call_operand.vmem [shape: bf16[16,1024], index: 0, kind: input, shape index: {}]   ;;  %s3771_s1 = inlined_call_operand.hbm [shape: bf16[1024,256], index: 1, kind: input, shape index: {}]   ;;  %s3772_s2 = inlined_call_operand.hbm [shape: f32[1,256], index: 2, kind: input, shape index: {}]   ;;  %s3773_s3 = inlined_call_operand.vmem [shape: bf16[256,128], index: 3, kind: input, shape index: {}]   ;;  %s3774_s4 = inlined_call_operand.hbm [shape: f32[1,128], index: 4, kind: input, shape index: {}]   ;;  %s3775_s5 = inlined_call_operand.vmem [shape: bf16[128,256], index: 5, kind: input, shape index: {}]   ;;  %s3776_s6 = inlined_call_operand.vmem [shape: f32[1,256], index: 6, kind: input, shape index: {}]   ;;  %s3777_s7 = inlined_call_operand.hbm [shape: bf16[256,128], index: 7, kind: input, shape index: {}]   ;;  %s3778_s8 = inlined_call_operand.vmem [shape: f32[1,128], index: 8, kind: input, shape index: {}]   ;;  %s3779_s9 = inlined_call_operand.hbm [shape: bf16[128,256], index: 9, kind: input, shape index: {}]   ;;  %s3780_s10 = inlined_call_operand.vmem [shape: f32[1,256], index: 10, kind: input, shape index: {}]   ;;  %s3781_s11 = inlined_call_operand.hbm [shape: bf16[256,128], index: 11, kind: input, shape index: {}]   ;;  %s3782_s12 = inlined_call_operand.vmem [shape: f32[1,128], index: 12, kind: input, shape index: {}]   ;;  %s3783_s13 = inlined_call_operand.vmem [shape: bf16[128,128], index: 13, kind: input, shape index: {}]   ;;  %s3784_s14 = inlined_call_operand.vmem [shape: f32[1,128], index: 14, kind: input, shape index: {}]   ;;  %s3785_s15 = inlined_call_operand.vmem [shape: bf16[16,128], index: 15, kind: output, shape index: {}]  }
   0x1   :  { %21 = vsyncpa [#allocation5], 0 }
   0x2   :  { %22 = vsyncpa [#allocation8], 0  ;;  %s44_s20 = sshll.u32 %s3772_s2, 4  ;;  %s45_s20 = int_to_ptr.hbm [resolvable:$true] %s44_s20 }
   0x3   :  { %23 = vsyncpa [#allocation11], 0  ;;  %s3386_s21 = smov [#allocation4]   ;;  %s71_s25 = sshll.u32 %s3777_s7, 4  ;;  %s72_s25 = int_to_ptr.hbm [resolvable:$true] %s71_s25 }
   0x4   :  { %s46_s22 = sshll.u32 %s3386_s21, 4  ;;  %s3387_s26 = smov [#allocation7]   ;;  %s47_s22 = int_to_ptr.vmem [resolvable:$true] %s46_s22 }
   0x5   :  { %49 = dma.hbm_to_vmem [thread:$0]  %s45_s20, 32, %s47_s22, [#allocation5]  }
   0x6   :  { %s73_s27 = sshll.u32 %s3387_s26, 4  ;;  %s3388_s28 = smov 64   ;;  %s74_s27 = int_to_ptr.vmem [resolvable:$true] %s73_s27 }
   0x7   :  { %s3389_s29 = smov 4   ;;  %s30_s16 = sshll.u32 %s3771_s1, 4  ;;  %s31_s16 = int_to_ptr.hbm [resolvable:$true] %s30_s16 }
   0x8   :  { %79 = dma.hbm_to_vmem [thread:$0]  %s72_s25, 2048, %s74_s27, [#allocation8], %s3388_s28, %s3388_s28, %s3389_s29  }
   0x9   :  { %s3390_s17 = smov [#allocation2]   ;;  %s57_s20 = sshll.u32 %s3774_s4, 4  ;;  %s58_s20 = int_to_ptr.hbm [resolvable:$true] %s57_s20 }
   0xa   :  { %s32_s18 = sshll.u32 %s3390_s17, 4  ;;  %s3391_s21 = smov 128   ;;  %s33_s18 = int_to_ptr.vmem [resolvable:$true] %s32_s18 }
   0xb   :  { %s3392_s22 = smov 8   ;;  %s3393_s23 = smov [#allocation6]  }
   0xc   :  { %38 = dma.hbm_to_vmem [thread:$0]  %s31_s16, 16384, %s33_s18, [#allocation3], %s3391_s21, %s3391_s21, %s3392_s22  }
   0xd   :  { %s59_s24 = sshll.u32 %s3393_s23, 4  ;;  %s86_s27 = sshll.u32 %s3779_s9, 4  ;;  %s60_s24 = int_to_ptr.vmem [resolvable:$true] %s59_s24  ;;  %s87_s27 = int_to_ptr.hbm [resolvable:$true] %s86_s27 }
   0xe   :  { %62 = dma.hbm_to_vmem [thread:$0]  %s58_s20, 16, %s60_s24, [#allocation5]  }
   0xf   :  { %s101_s30 = sshll.u32 %s3781_s11, 4  ;;  %s3394_s17 = smov [#allocation9]   ;;  %s102_s30 = int_to_ptr.hbm [resolvable:$true] %s101_s30 }
  0x10   :  { %s88_s7 = sshll.u32 %s3394_s17, 4  ;;  %s3395_s4 = smov [#allocation10]   ;;  %s89_s7 = int_to_ptr.vmem [resolvable:$true] %s88_s7 }
  0x11   :  { %94 = dma.hbm_to_vmem [thread:$0]  %s87_s27, 2048, %s89_s7, [#allocation8], %s3391_s21, %s3391_s21, %s3392_s22  }
  0x12   :  { %s103_s16 = sshll.u32 %s3395_s4, 4  ;;  %s104_s16 = int_to_ptr.vmem [resolvable:$true] %s103_s16 }
  0x13   :  { %109 = dma.hbm_to_vmem [thread:$0]  %s102_s30, 2048, %s104_s16, [#allocation11], %s3388_s28, %s3388_s28, %s3389_s29  }
  0x14   :  { %3378 = dma.done.wait [#allocation3], 16384  }
  0x15   :  { %3379 = vsyncadd [#allocation3], 4294950912 }
  0x16   :  { %3380 = dma.done.wait [#allocation5], 48  }
  0x17   :  { %3381 = vsyncadd [#allocation5], 4294967248 }
  0x18   :  { %3382 = dma.done.wait [#allocation8], 4096  }
  0x19   :  { %3383 = vsyncadd [#allocation8], 4294963200 }
  0x1a   :  { %3384 = dma.done.wait [#allocation11], 2048  }
  0x1b   :  { %3385 = vsyncadd [#allocation11], 4294965248  ;;  %v2175_v0 = vld [vmem:[#allocation2 + $0x70] sm:$0xf]  ;;  %v3006_v1 = vld [vmem:[#allocation2 + $0x74] sm:$0xf0] }
  0x1c   :  { %v2239_v2 = vld [vmem:[#allocation2 + $0xf0] sm:$0xf]  ;;  %v2176_v3 = vor.u32 %v3006_v1, %v2175_v0  ;;  %v3022_v4 = vld [vmem:[#allocation2 + $0xf4] sm:$0xf0]  ;;  %v2167_v11 = vld [vmem:[#allocation2 + $0x60] sm:$0xf] }
  0x1d   :  { %v2303_v5 = vld [vmem:[#allocation2 + $0x170] sm:$0xf]  ;;  %v3038_v6 = vld [vmem:[#allocation2 + $0x174] sm:$0xf0]  ;;  %v2240_v7 = vor.u32 %v3022_v4, %v2239_v2  ;;  %v3004_v13 = vld [vmem:[#allocation2 + $0x64] sm:$0xf0] }
  0x1e   :  { %v2304_v8 = vor.u32 %v3038_v6, %v2303_v5  ;;  %v2367_v9 = vld [vmem:[#allocation2 + $0x1f0] sm:$0xf]  ;;  %v3054_v10 = vld [vmem:[#allocation2 + $0x1f4] sm:$0xf0]  ;;  %962 = vmatpush.bf16.msra.mxu0 %v2176_v3  ;;  %v2231_v14 = vld [vmem:[#allocation2 + $0xe0] sm:$0xf]  ;;  %v2168_v16 = vor.u32 %v3004_v13, %v2167_v11 }
  0x1f   :  { %v2368_v12 = vor.u32 %v3054_v10, %v2367_v9  ;;  %v3020_v15 = vld [vmem:[#allocation2 + $0xe4] sm:$0xf0]  ;;  %976 = vmatpush.bf16.msra.mxu1 %v2240_v7  ;;  %v2295_v18 = vld [vmem:[#allocation2 + $0x160] sm:$0xf]  ;;  %v2159_v23 = vld [vmem:[#allocation2 + $0x50] sm:$0xf] }
  0x20   :  { %990 = vmatpush.bf16.msra.mxu2 %v2304_v8  ;;  %v2232_v17 = vor.u32 %v3020_v15, %v2231_v14  ;;  %v3036_v19 = vld [vmem:[#allocation2 + $0x164] sm:$0xf0]  ;;  %v2359_v20 = vld [vmem:[#allocation2 + $0x1e0] sm:$0xf]  ;;  %v3002_v24 = vld [vmem:[#allocation2 + $0x54] sm:$0xf0] }
  0x21   :  { %1004 = vmatpush.bf16.msra.mxu3 %v2368_v12  ;;  %v2296_v21 = vor.u32 %v3036_v19, %v2295_v18  ;;  %v3052_v22 = vld [vmem:[#allocation2 + $0x1e4] sm:$0xf0]  ;;  %v2223_v26 = vld [vmem:[#allocation2 + $0xd0] sm:$0xf]  ;;  %v3018_v27 = vld [vmem:[#allocation2 + $0xd4] sm:$0xf0]  ;;  %v2160_v29 = vor.u32 %v3002_v24, %v2159_v23 }
  0x22   :  { %v2360_v25 = vor.u32 %v3052_v22, %v2359_v20  ;;  %v2287_v28 = vld [vmem:[#allocation2 + $0x150] sm:$0xf]  ;;  %963 = vmatpush.bf16.msra.mxu0 %v2168_v16  ;;  %v3034_v30 = vld [vmem:[#allocation2 + $0x154] sm:$0xf0]  ;;  %v2224_v33 = vor.u32 %v3018_v27, %v2223_v26  ;;  %v2151_v35 = vld [vmem:[#allocation2 + $0x40] sm:$0xf] }
  0x23   :  { %v2351_v31 = vld [vmem:[#allocation2 + $0x1d0] sm:$0xf]  ;;  %v3050_v32 = vld [vmem:[#allocation2 + $0x1d4] sm:$0xf0]  ;;  %977 = vmatpush.bf16.msra.mxu1 %v2232_v17  ;;  %v2288_v34 = vor.u32 %v3034_v30, %v2287_v28  ;;  %v3000_v36 = vld [vmem:[#allocation2 + $0x44] sm:$0xf0] }
  0x24   :  { %991 = vmatpush.bf16.msra.mxu2 %v2296_v21  ;;  %v2215_v37 = vld [vmem:[#allocation2 + $0xc0] sm:$0xf]  ;;  %v2352_v38 = vor.u32 %v3050_v32, %v2351_v31  ;;  %v3016_v39 = vld [vmem:[#allocation2 + $0xc4] sm:$0xf0]  ;;  %v2152_v44 = vor.u32 %v3000_v36, %v2151_v35  ;;  %v2143_v47 = vld [vmem:[#allocation2 + $0x30] sm:$0xf] }
  0x25   :  { %1005 = vmatpush.bf16.msra.mxu3 %v2360_v25  ;;  %v2279_v40 = vld [vmem:[#allocation2 + $0x140] sm:$0xf]  ;;  %v3032_v41 = vld [vmem:[#allocation2 + $0x144] sm:$0xf0]  ;;  %v2216_v45 = vor.u32 %v3016_v39, %v2215_v37  ;;  %v2998_v48 = vld [vmem:[#allocation2 + $0x34] sm:$0xf0] }
  0x26   :  { %v2343_v42 = vld [vmem:[#allocation2 + $0x1c0] sm:$0xf]  ;;  %v3048_v43 = vld [vmem:[#allocation2 + $0x1c4] sm:$0xf0]  ;;  %964 = vmatpush.bf16.msra.mxu0 %v2160_v29  ;;  %v2280_v46 = vor.u32 %v3032_v41, %v2279_v40  ;;  %v2207_v49 = vld [vmem:[#allocation2 + $0xb0] sm:$0xf]  ;;  %v2144_v56 = vor.u32 %v2998_v48, %v2143_v47 }
  0x27   :  { %978 = vmatpush.bf16.msra.mxu1 %v2224_v33  ;;  %v2344_v50 = vor.u32 %v3048_v43, %v2343_v42  ;;  %v3014_v51 = vld [vmem:[#allocation2 + $0xb4] sm:$0xf0]  ;;  %v2271_v52 = vld [vmem:[#allocation2 + $0x130] sm:$0xf]  ;;  %v2135_v59 = vld [vmem:[#allocation2 + $0x20] sm:$0xf] }
  0x28   :  { %992 = vmatpush.bf16.msra.mxu2 %v2288_v34  ;;  %v3030_v53 = vld [vmem:[#allocation2 + $0x134] sm:$0xf0]  ;;  %v2335_v54 = vld [vmem:[#allocation2 + $0x1b0] sm:$0xf]  ;;  %v2208_v57 = vor.u32 %v3014_v51, %v2207_v49  ;;  %v2996_v60 = vld [vmem:[#allocation2 + $0x24] sm:$0xf0] }
  0x29   :  { %1006 = vmatpush.bf16.msra.mxu3 %v2352_v38  ;;  %v3046_v55 = vld [vmem:[#allocation2 + $0x1b4] sm:$0xf0]  ;;  %v2272_v58 = vor.u32 %v3030_v53, %v2271_v52  ;;  %v2199_v61 = vld [vmem:[#allocation2 + $0xa0] sm:$0xf]  ;;  %v3012_v63 = vld [vmem:[#allocation2 + $0xa4] sm:$0xf0]  ;;  %v2136_v4 = vor.u32 %v2996_v60, %v2135_v59 }
  0x2a   :  { %965 = vmatpush.bf16.msra.mxu0 %v2152_v44  ;;  %v2336_v62 = vor.u32 %v3046_v55, %v2335_v54  ;;  %v2263_v0 = vld [vmem:[#allocation2 + $0x120] sm:$0xf]  ;;  %v3028_v1 = vld [vmem:[#allocation2 + $0x124] sm:$0xf0]  ;;  %v2200_v5 = vor.u32 %v3012_v63, %v2199_v61  ;;  %v2127_v7 = vld [vmem:[#allocation2 + $0x10] sm:$0xf] }
  0x2b   :  { %979 = vmatpush.bf16.msra.mxu1 %v2216_v45  ;;  %v2327_v2 = vld [vmem:[#allocation2 + $0x1a0] sm:$0xf]  ;;  %v3044_v3 = vld [vmem:[#allocation2 + $0x1a4] sm:$0xf0]  ;;  %v2264_v6 = vor.u32 %v3028_v1, %v2263_v0  ;;  %v2994_v8 = vld [vmem:[#allocation2 + $0x14] sm:$0xf0] }
  0x2c   :  { %993 = vmatpush.bf16.msra.mxu2 %v2280_v46  ;;  %v2191_v9 = vld [vmem:[#allocation2 + $0x90] sm:$0xf]  ;;  %v2328_v10 = vor.u32 %v3044_v3, %v2327_v2  ;;  %v3010_v11 = vld [vmem:[#allocation2 + $0x94] sm:$0xf0]  ;;  %v2128_v16 = vor.u32 %v2994_v8, %v2127_v7  ;;  %v2119_v17 = vld [vmem:[#allocation2] sm:$0xf] }
  0x2d   :  { %1007 = vmatpush.bf16.msra.mxu3 %v2344_v50  ;;  %v2255_v12 = vld [vmem:[#allocation2 + $0x110] sm:$0xf]  ;;  %v3026_v13 = vld [vmem:[#allocation2 + $0x114] sm:$0xf0]  ;;  %v2992_v18 = vld [vmem:[#allocation2 + $0x4] sm:$0xf0]  ;;  %v2192_v19 = vor.u32 %v3010_v11, %v2191_v9 }
  0x2e   :  { %966 = vmatpush.bf16.msra.mxu0 %v2144_v56  ;;  %v2319_v14 = vld [vmem:[#allocation2 + $0x190] sm:$0xf]  ;;  %v3042_v15 = vld [vmem:[#allocation2 + $0x194] sm:$0xf0]  ;;  %v2256_v20 = vor.u32 %v3026_v13, %v2255_v12  ;;  %v2183_v21 = vld [vmem:[#allocation2 + $0x80] sm:$0xf]  ;;  %v2120_v31 = vor.u32 %v2992_v18, %v2119_v17 }
  0x2f   :  { %980 = vmatpush.bf16.msra.mxu1 %v2208_v57  ;;  %v3008_v22 = vld [vmem:[#allocation2 + $0x84] sm:$0xf0]  ;;  %v2247_v23 = vld [vmem:[#allocation2 + $0x100] sm:$0xf]  ;;  %v2320_v24 = vor.u32 %v3042_v15, %v2319_v14  ;;  %v2431_v28 = vld [vmem:[#allocation2 + $0x270] sm:$0xf] }
  0x30   :  { %994 = vmatpush.bf16.msra.mxu2 %v2272_v58  ;;  %v3024_v25 = vld [vmem:[#allocation2 + $0x104] sm:$0xf0]  ;;  %v2311_v26 = vld [vmem:[#allocation2 + $0x180] sm:$0xf]  ;;  %v3070_v29 = vld [vmem:[#allocation2 + $0x274] sm:$0xf0]  ;;  %v2184_v35 = vor.u32 %v3008_v22, %v2183_v21 }
  0x31   :  { %1008 = vmatpush.bf16.msra.mxu3 %v2336_v62  ;;  %v3040_v27 = vld [vmem:[#allocation2 + $0x184] sm:$0xf0]  ;;  %v2495_v30 = vld [vmem:[#allocation2 + $0x2f0] sm:$0xf]  ;;  %v3086_v32 = vld [vmem:[#allocation2 + $0x2f4] sm:$0xf0]  ;;  %v2248_v36 = vor.u32 %v3024_v25, %v2247_v23  ;;  %v2432_v40 = vor.u32 %v3070_v29, %v2431_v28 }
  0x32   :  { %967 = vmatpush.bf16.msra.mxu0 %v2136_v4  ;;  %v2559_v33 = vld [vmem:[#allocation2 + $0x370] sm:$0xf]  ;;  %v3102_v34 = vld [vmem:[#allocation2 + $0x374] sm:$0xf0]  ;;  %v2312_v39 = vor.u32 %v3040_v27, %v2311_v26  ;;  %v2423_v41 = vld [vmem:[#allocation2 + $0x260] sm:$0xf]  ;;  %v2496_v43 = vor.u32 %v3086_v32, %v2495_v30 }
  0x33   :  { %981 = vmatpush.bf16.msra.mxu1 %v2200_v5  ;;  %v2623_v37 = vld [vmem:[#allocation2 + $0x3f0] sm:$0xf]  ;;  %v3118_v38 = vld [vmem:[#allocation2 + $0x3f4] sm:$0xf0]  ;;  %v3068_v42 = vld [vmem:[#allocation2 + $0x264] sm:$0xf0]  ;;  %v2560_v44 = vor.u32 %v3102_v34, %v2559_v33 }
  0x34   :  { %995 = vmatpush.bf16.msra.mxu2 %v2264_v6  ;;  %v2487_v45 = vld [vmem:[#allocation2 + $0x2e0] sm:$0xf]  ;;  %v3084_v46 = vld [vmem:[#allocation2 + $0x2e4] sm:$0xf0]  ;;  %v2624_v48 = vor.u32 %v3118_v38, %v2623_v37  ;;  %v2424_v55 = vor.u32 %v3068_v42, %v2423_v41  ;;  %v2415_v56 = vld [vmem:[#allocation2 + $0x250] sm:$0xf] }
  0x35   :  { %1009 = vmatpush.bf16.msra.mxu3 %v2328_v10  ;;  %v2551_v47 = vld [vmem:[#allocation2 + $0x360] sm:$0xf]  ;;  %v3100_v49 = vld [vmem:[#allocation2 + $0x364] sm:$0xf0]  ;;  %v3066_v57 = vld [vmem:[#allocation2 + $0x254] sm:$0xf0]  ;;  %v2488_v60 = vor.u32 %v3084_v46, %v2487_v45 }
  0x36   :  { %968 = vmatpush.bf16.msra.mxu0 %v2128_v16  ;;  %v2615_v50 = vld [vmem:[#allocation2 + $0x3e0] sm:$0xf]  ;;  %v3116_v51 = vld [vmem:[#allocation2 + $0x3e4] sm:$0xf0]  ;;  %v2552_v61 = vor.u32 %v3100_v49, %v2551_v47  ;;  %v2479_v62 = vld [vmem:[#allocation2 + $0x2d0] sm:$0xf]  ;;  %v2416_v9 = vor.u32 %v3066_v57, %v2415_v56 }
  0x37   :  { %982 = vmatpush.bf16.msra.mxu1 %v2192_v19  ;;  %v2087_v52 = vld [vmem:[%s3770_s0] sm:$0xf]  ;;  %v2095_v54 = vld [vmem:[%s3770_s0 + $0x8] sm:$0xf]  ;;  %v3082_v63 = vld [vmem:[#allocation2 + $0x2d4] sm:$0xf0]  ;;  %v2616_v2 = vor.u32 %v3116_v51, %v2615_v50 }
  0x38   :  { %996 = vmatpush.bf16.msra.mxu2 %v2256_v20  ;;  %v2987_v53 = vld [vmem:[%s3770_s0 + $0x1c] sm:$0xf0]  ;;  %v2988_v59 = vld [vmem:[%s3770_s0 + $0x24] sm:$0xf0]  ;;  %v2543_v0 = vld [vmem:[#allocation2 + $0x350] sm:$0xf]  ;;  %v2480_v12 = vor.u32 %v3082_v63, %v2479_v62 }
  0x39   :  { %1010 = vmatpush.bf16.msra.mxu3 %v2320_v24  ;;  %v3509_v58 = vor.u32 %v2987_v53, %v2087_v52  ;;  %v3514_v1 = vor.u32 %v2988_v59, %v2095_v54  ;;  %v3098_v3 = vld [vmem:[#allocation2 + $0x354] sm:$0xf0]  ;;  %v2607_v4 = vld [vmem:[#allocation2 + $0x3d0] sm:$0xf]  ;;  %v2983_v6 = vld [vmem:[%s3770_s0 + $0x4] sm:$0xf] }
  0x3a   :  { %969 = vmatpush.bf16.msra.mxu0 %v2120_v31  ;;  %v3114_v5 = vld [vmem:[#allocation2 + $0x3d4] sm:$0xf0]  ;;  %v2089_v7 = vld [vmem:[%s3770_s0 + $0x20] sm:$0xf0]  ;;  %v2984_v8 = vld [vmem:[%s3770_s0 + $0xc] sm:$0xf]  ;;  %v2544_v13 = vor.u32 %v3098_v3, %v2543_v0 }
  0x3b   :  { %983 = vmatpush.bf16.msra.mxu1 %v2184_v35  ;;  %v3527_v10 = vor.u32 %v2983_v6, %v2089_v7  ;;  %v2097_v11 = vld [vmem:[%s3770_s0 + $0x28] sm:$0xf0]  ;;  %v2407_v14 = vld [vmem:[#allocation2 + $0x240] sm:$0xf]  ;;  %v3064_v15 = vld [vmem:[#allocation2 + $0x244] sm:$0xf0]  ;;  %v2608_v18 = vor.u32 %v3114_v5, %v2607_v4 }
  0x3c   :  { %997 = vmatpush.bf16.msra.mxu2 %v2248_v36  ;;  %v2471_v16 = vld [vmem:[#allocation2 + $0x2c0] sm:$0xf]  ;;  %v3532_v17 = vor.u32 %v2984_v8, %v2097_v11  ;;  %v3080_v19 = vld [vmem:[#allocation2 + $0x2c4] sm:$0xf0]  ;;  %v2408_v24 = vor.u32 %v3064_v15, %v2407_v14  ;;  %v2399_v27 = vld [vmem:[#allocation2 + $0x230] sm:$0xf] }
  0x3d   :  { %1011 = vmatpush.bf16.msra.mxu3 %v2312_v39  ;;  %970 = vmatmul.bf16.vlgmr.msra.gmra.mxu0 %v3509_v58  ;;  %v2535_v20 = vld [vmem:[#allocation2 + $0x340] sm:$0xf]  ;;  %v3096_v21 = vld [vmem:[#allocation2 + $0x344] sm:$0xf0]  ;;  %v2472_v25 = vor.u32 %v3080_v19, %v2471_v16  ;;  %v3062_v28 = vld [vmem:[#allocation2 + $0x234] sm:$0xf0] }
  0x3e   :  { %1018 = vmatpush.bf16.msrb.mxu0 %v2432_v40  ;;  %984 = vmatmul.bf16.vlgmr.msra.gmra.mxu1 %v3527_v10  ;;  %v2599_v22 = vld [vmem:[#allocation2 + $0x3c0] sm:$0xf]  ;;  %v3112_v23 = vld [vmem:[#allocation2 + $0x3c4] sm:$0xf0]  ;;  %v2536_v26 = vor.u32 %v3096_v21, %v2535_v20  ;;  %v2463_v29 = vld [vmem:[#allocation2 + $0x2b0] sm:$0xf]  ;;  %v2400_v36 = vor.u32 %v3062_v28, %v2399_v27 }
  0x3f   :  { %1032 = vmatpush.bf16.msrb.mxu1 %v2496_v43  ;;  %998 = vmatmul.bf16.vlgmr.msra.gmra.mxu2 %v3514_v1  ;;  %v2600_v30 = vor.u32 %v3112_v23, %v2599_v22  ;;  %v3078_v31 = vld [vmem:[#allocation2 + $0x2b4] sm:$0xf0]  ;;  %v2527_v32 = vld [vmem:[#allocation2 + $0x330] sm:$0xf]  ;;  %v2391_v39 = vld [vmem:[#allocation2 + $0x220] sm:$0xf] }
  0x40   :  { %1046 = vmatpush.bf16.msrb.mxu2 %v2560_v44  ;;  %1012 = vmatmul.bf16.vlgmr.msra.gmra.mxu3 %v3532_v17  ;;  %v3094_v33 = vld [vmem:[#allocation2 + $0x334] sm:$0xf0]  ;;  %v2591_v34 = vld [vmem:[#allocation2 + $0x3b0] sm:$0xf]  ;;  %v2464_v37 = vor.u32 %v3078_v31, %v2463_v29  ;;  %v3060_v40 = vld [vmem:[#allocation2 + $0x224] sm:$0xf0] }
  0x41   :  { %1060 = vmatpush.bf16.msrb.mxu3 %v2624_v48  ;;  %v3110_v35 = vld [vmem:[#allocation2 + $0x3b4] sm:$0xf0]  ;;  %v2528_v38 = vor.u32 %v3094_v33, %v2527_v32  ;;  %v2455_v41 = vld [vmem:[#allocation2 + $0x2a0] sm:$0xf]  ;;  %v3076_v43 = vld [vmem:[#allocation2 + $0x2a4] sm:$0xf0]  ;;  %v2392_v48 = vor.u32 %v3060_v40, %v2391_v39 }
  0x42   :  { %1019 = vmatpush.bf16.msrb.mxu0 %v2424_v55  ;;  %v2592_v42 = vor.u32 %v3110_v35, %v2591_v34  ;;  %v2519_v44 = vld [vmem:[#allocation2 + $0x320] sm:$0xf]  ;;  %v3092_v45 = vld [vmem:[#allocation2 + $0x324] sm:$0xf0]  ;;  %v2383_v49 = vld [vmem:[#allocation2 + $0x210] sm:$0xf]  ;;  %v2456_v50 = vor.u32 %v3076_v43, %v2455_v41 }
  0x43   :  { %1033 = vmatpush.bf16.msrb.mxu1 %v2488_v60  ;;  %v2583_v46 = vld [vmem:[#allocation2 + $0x3a0] sm:$0xf]  ;;  %v3108_v47 = vld [vmem:[#allocation2 + $0x3a4] sm:$0xf0]  ;;  %v2520_v51 = vor.u32 %v3092_v45, %v2519_v44  ;;  %v3058_v52 = vld [vmem:[#allocation2 + $0x214] sm:$0xf0] }
  0x44   :  { %1047 = vmatpush.bf16.msrb.mxu2 %v2552_v61  ;;  %v2447_v53 = vld [vmem:[#allocation2 + $0x290] sm:$0xf]  ;;  %v3074_v54 = vld [vmem:[#allocation2 + $0x294] sm:$0xf0]  ;;  %v2584_v55 = vor.u32 %v3108_v47, %v2583_v46  ;;  %v2375_v61 = vld [vmem:[#allocation2 + $0x200] sm:$0xf]  ;;  %v2384_v63 = vor.u32 %v3058_v52, %v2383_v49 }
  0x45   :  { %1061 = vmatpush.bf16.msrb.mxu3 %v2616_v2  ;;  %v2511_v56 = vld [vmem:[#allocation2 + $0x310] sm:$0xf]  ;;  %v3090_v57 = vld [vmem:[#allocation2 + $0x314] sm:$0xf0]  ;;  %v3056_v62 = vld [vmem:[#allocation2 + $0x204] sm:$0xf0]  ;;  %v2448_v5 = vor.u32 %v3074_v54, %v2447_v53 }
  0x46   :  { %1020 = vmatpush.bf16.msrb.mxu0 %v2416_v9  ;;  %v2575_v59 = vld [vmem:[#allocation2 + $0x390] sm:$0xf]  ;;  %v3106_v60 = vld [vmem:[#allocation2 + $0x394] sm:$0xf0]  ;;  %v2439_v0 = vld [vmem:[#allocation2 + $0x280] sm:$0xf]  ;;  %v2512_v6 = vor.u32 %v3090_v57, %v2511_v56  ;;  %v2376_v19 = vor.u32 %v3056_v62, %v2375_v61 }
  0x47   :  { %1034 = vmatpush.bf16.msrb.mxu1 %v2480_v12  ;;  %v3072_v2 = vld [vmem:[#allocation2 + $0x284] sm:$0xf0]  ;;  %v2503_v3 = vld [vmem:[#allocation2 + $0x300] sm:$0xf]  ;;  %v3005_v9 = vld [vmem:[#allocation2 + $0x74] sm:$0xf]  ;;  %v2576_v11 = vor.u32 %v3106_v60, %v2575_v59 }
  0x48   :  { %1048 = vmatpush.bf16.msrb.mxu2 %v2544_v13  ;;  %v3088_v4 = vld [vmem:[#allocation2 + $0x304] sm:$0xf0]  ;;  %v2567_v7 = vld [vmem:[#allocation2 + $0x380] sm:$0xf]  ;;  %v2177_v12 = vld [vmem:[#allocation2 + $0x78] sm:$0xf0]  ;;  %v2440_v23 = vor.u32 %v3072_v2, %v2439_v0 }
  0x49   :  { %1062 = vmatpush.bf16.msrb.mxu3 %v2608_v18  ;;  %v3104_v8 = vld [vmem:[#allocation2 + $0x384] sm:$0xf0]  ;;  %v3021_v13 = vld [vmem:[#allocation2 + $0xf4] sm:$0xf]  ;;  %v2241_v14 = vld [vmem:[#allocation2 + $0xf8] sm:$0xf0]  ;;  %v2180_v29 = vor.u32 %v3005_v9, %v2177_v12 }
  0x4a   :  { %1021 = vmatpush.bf16.msrb.mxu0 %v2408_v24  ;;  %v3037_v15 = vld [vmem:[#allocation2 + $0x174] sm:$0xf]  ;;  %v2305_v16 = vld [vmem:[#allocation2 + $0x178] sm:$0xf0]  ;;  %v2103_v21 = vld [vmem:[%s3770_s0 + $0x10] sm:$0xf]  ;;  %v2504_v24 = vor.u32 %v3088_v4, %v2503_v3  ;;  %v2568_v28 = vor.u32 %v3104_v8, %v2567_v7  ;;  %v2244_v33 = vor.u32 %v3021_v13, %v2241_v14 }
  0x4b   :  { %1035 = vmatpush.bf16.msrb.mxu1 %v2472_v25  ;;  %v3053_v18 = vld [vmem:[#allocation2 + $0x1f4] sm:$0xf]  ;;  %v2369_v20 = vld [vmem:[#allocation2 + $0x1f8] sm:$0xf0]  ;;  %v2989_v22 = vld [vmem:[%s3770_s0 + $0x2c] sm:$0xf0]  ;;  %v2308_v34 = vor.u32 %v3037_v15, %v2305_v16 }
  0x4c   :  { %1049 = vmatpush.bf16.msrb.mxu2 %v2536_v26  ;;  %v2111_v25 = vld [vmem:[%s3770_s0 + $0x18] sm:$0xf]  ;;  %v2985_v27 = vld [vmem:[%s3770_s0 + $0x14] sm:$0xf]  ;;  %v2986_v31 = vld [vmem:[%s3770_s0 + $0x1c] sm:$0xf]  ;;  %v3560_v39 = vor.u32 %v2989_v22, %v2103_v21 }
  0x4d   :  { %1063 = vmatpush.bf16.msrb.mxu3 %v2600_v30  ;;  %v2990_v26 = vld [vmem:[%s3770_s0 + $0x34] sm:$0xf0]  ;;  %v2105_v30 = vld [vmem:[%s3770_s0 + $0x30] sm:$0xf0]  ;;  %v2113_v32 = vld [vmem:[%s3770_s0 + $0x38] sm:$0xf0] }
  0x4e   :  { %1022 = vmatpush.bf16.msrb.mxu0 %v2400_v36  ;;  %v3003_v35 = vld [vmem:[#allocation2 + $0x64] sm:$0xf]  ;;  %v2169_v36 = vld [vmem:[#allocation2 + $0x68] sm:$0xf0]  ;;  %v3562_v43 = vor.u32 %v2990_v26, %v2111_v25  ;;  %v3564_v44 = vor.u32 %v2985_v27, %v2105_v30  ;;  %v3566_v47 = vor.u32 %v2986_v31, %v2113_v32  ;;  %v2161_v52 = vld [vmem:[#allocation2 + $0x58] sm:$0xf0] }
  0x4f   :  { %1036 = vmatpush.bf16.msrb.mxu1 %v2464_v37  ;;  %v3019_v37 = vld [vmem:[#allocation2 + $0xe4] sm:$0xf]  ;;  %v2233_v40 = vld [vmem:[#allocation2 + $0xe8] sm:$0xf0]  ;;  %v3017_v53 = vld [vmem:[#allocation2 + $0xd4] sm:$0xf] }
  0x50   :  { %1050 = vmatpush.bf16.msrb.mxu2 %v2528_v38  ;;  %v2372_v38 = vor.u32 %v3053_v18, %v2369_v20  ;;  %v3035_v41 = vld [vmem:[#allocation2 + $0x164] sm:$0xf]  ;;  %v2361_v46 = vld [vmem:[#allocation2 + $0x1e8] sm:$0xf0]  ;;  %v2236_v49 = vor.u32 %v3019_v37, %v2233_v40  ;;  %v3033_v56 = vld [vmem:[#allocation2 + $0x154] sm:$0xf] }
  0x51   :  { %1064 = vmatpush.bf16.msrb.mxu3 %v2592_v42  ;;  %v2297_v42 = vld [vmem:[#allocation2 + $0x168] sm:$0xf0]  ;;  %v3051_v45 = vld [vmem:[#allocation2 + $0x1e4] sm:$0xf]  ;;  %v2289_v57 = vld [vmem:[#allocation2 + $0x158] sm:$0xf0] }
  0x52   :  { %1023 = vmatpush.bf16.msrb.mxu0 %v2392_v48  ;;  %v2172_v48 = vor.u32 %v3003_v35, %v2169_v36  ;;  %v2364_v54 = vor.u32 %v3051_v45, %v2361_v46  ;;  %v3049_v59 = vld [vmem:[#allocation2 + $0x1d4] sm:$0xf]  ;;  %v2353_v60 = vld [vmem:[#allocation2 + $0x1d8] sm:$0xf0]  ;;  %v2999_v0 = vld [vmem:[#allocation2 + $0x44] sm:$0xf] }
  0x53   :  { %1037 = vmatpush.bf16.msrb.mxu1 %v2456_v50  ;;  %v2300_v50 = vor.u32 %v3035_v41, %v2297_v42  ;;  %v2153_v2 = vld [vmem:[#allocation2 + $0x48] sm:$0xf0]  ;;  %v3015_v3 = vld [vmem:[#allocation2 + $0xc4] sm:$0xf]  ;;  %v2356_v4 = vor.u32 %v3049_v59, %v2353_v60  ;;  %v2997_v14 = vld [vmem:[#allocation2 + $0x34] sm:$0xf] }
  0x54   :  { %1051 = vmatpush.bf16.msrb.mxu2 %v2520_v51  ;;  %v3001_v51 = vld [vmem:[#allocation2 + $0x54] sm:$0xf]  ;;  %v2281_v7 = vld [vmem:[#allocation2 + $0x148] sm:$0xf0]  ;;  %v3047_v8 = vld [vmem:[#allocation2 + $0x1c4] sm:$0xf] }
  0x55   :  { %1065 = vmatpush.bf16.msrb.mxu3 %v2584_v55  ;;  %v2225_v55 = vld [vmem:[#allocation2 + $0xd8] sm:$0xf0]  ;;  %v2164_v61 = vor.u32 %v3001_v51, %v2161_v52  ;;  %v2345_v9 = vld [vmem:[#allocation2 + $0x1c8] sm:$0xf0]  ;;  %v3013_v16 = vld [vmem:[#allocation2 + $0xb4] sm:$0xf] }
  0x56   :  { %1024 = vmatpush.bf16.msrb.mxu0 %v2384_v63  ;;  %v2228_v62 = vor.u32 %v3017_v53, %v2225_v55  ;;  %v2292_v63 = vor.u32 %v3033_v56, %v2289_v57  ;;  %v2145_v15 = vld [vmem:[#allocation2 + $0x38] sm:$0xf0]  ;;  %v2348_v18 = vor.u32 %v3047_v8, %v2345_v9  ;;  %v3029_v20 = vld [vmem:[#allocation2 + $0x134] sm:$0xf]  ;;  %v2995_v27 = vld [vmem:[#allocation2 + $0x24] sm:$0xf] }
  0x57   :  { %1038 = vmatpush.bf16.msrb.mxu1 %v2448_v5  ;;  %v2217_v5 = vld [vmem:[#allocation2 + $0xc8] sm:$0xf0]  ;;  %v2273_v21 = vld [vmem:[#allocation2 + $0x138] sm:$0xf0]  ;;  %v3045_v22 = vld [vmem:[#allocation2 + $0x1b4] sm:$0xf] }
  0x58   :  { %1052 = vmatpush.bf16.msrb.mxu2 %v2512_v6  ;;  %v3031_v6 = vld [vmem:[#allocation2 + $0x144] sm:$0xf]  ;;  %v2220_v12 = vor.u32 %v3015_v3, %v2217_v5  ;;  %v2276_v26 = vor.u32 %v3029_v20, %v2273_v21  ;;  %v2201_v31 = vld [vmem:[#allocation2 + $0xa8] sm:$0xf0]  ;;  %v2993_v40 = vld [vmem:[#allocation2 + $0x14] sm:$0xf] }
  0x59   :  { %1066 = vmatpush.bf16.msrb.mxu3 %v2576_v11  ;;  %v2156_v11 = vor.u32 %v2999_v0, %v2153_v2  ;;  %v2284_v13 = vor.u32 %v3031_v6, %v2281_v7  ;;  %v3027_v32 = vld [vmem:[#allocation2 + $0x124] sm:$0xf]  ;;  %v2329_v35 = vld [vmem:[#allocation2 + $0x1a8] sm:$0xf0]  ;;  %v2129_v41 = vld [vmem:[#allocation2 + $0x18] sm:$0xf0] }
  0x5a   :  { %1025 = vmatpush.bf16.msrb.mxu0 %v2376_v19  ;;  %v2209_v19 = vld [vmem:[#allocation2 + $0xb8] sm:$0xf0]  ;;  %v3009_v42 = vld [vmem:[#allocation2 + $0x94] sm:$0xf]  ;;  %v2132_v52 = vor.u32 %v2993_v40, %v2129_v41  ;;  %v2991_v53 = vld [vmem:[#allocation2 + $0x4] sm:$0xf] }
  0x5b   :  { %1039 = vmatpush.bf16.msrb.mxu1 %v2440_v23  ;;  %v2337_v23 = vld [vmem:[#allocation2 + $0x1b8] sm:$0xf0]  ;;  %v2212_v25 = vor.u32 %v3013_v16, %v2209_v19  ;;  %v3007_v57 = vld [vmem:[#allocation2 + $0x84] sm:$0xf]  ;;  %v2185_v59 = vld [vmem:[#allocation2 + $0x88] sm:$0xf0] }
  0x5c   :  { %1053 = vmatpush.bf16.msrb.mxu2 %v2504_v24  ;;  %v2148_v24 = vor.u32 %v2997_v14, %v2145_v15  ;;  %v2340_v30 = vor.u32 %v3045_v22, %v2337_v23  ;;  %v2193_v46 = vld [vmem:[#allocation2 + $0x98] sm:$0xf0]  ;;  %v3023_v60 = vld [vmem:[#allocation2 + $0x104] sm:$0xf]  ;;  %v2313_v0 = vld [vmem:[#allocation2 + $0x188] sm:$0xf0]  ;;  %v2188_v9 = vor.u32 %v3007_v57, %v2185_v59 }
  0x5d   :  { %1067 = vmatpush.bf16.msrb.mxu3 %v2568_v28  ;;  %1026 = vmatmul.bf16.vlgmr.msrb.gmra.mxu0 %v3560_v39  ;;  %v2137_v28 = vld [vmem:[#allocation2 + $0x28] sm:$0xf0]  ;;  %v2321_v51 = vld [vmem:[#allocation2 + $0x198] sm:$0xf0]  ;;  %v2196_v55 = vor.u32 %v3009_v42, %v2193_v46  ;;  %v3069_v2 = vld [vmem:[#allocation2 + $0x274] sm:$0xf] }
  0x5e   :  { %1074 = vmatpush.bf16.msra.mxu0 %v2180_v29  ;;  %1040 = vmatmul.bf16.vlgmr.msrb.gmra.mxu1 %v3564_v44  ;;  %v3011_v29 = vld [vmem:[#allocation2 + $0xa4] sm:$0xf]  ;;  %v2140_v36 = vor.u32 %v2995_v27, %v2137_v28  ;;  %v2433_v3 = vld [vmem:[#allocation2 + $0x278] sm:$0xf0]  ;;  %v3101_v7 = vld [vmem:[#allocation2 + $0x374] sm:$0xf] }
  0x5f   :  { %1088 = vmatpush.bf16.msra.mxu1 %v2244_v33  ;;  %1054 = vmatmul.bf16.vlgmr.msrb.gmra.mxu2 %v3562_v43  ;;  %v2265_v33 = vld [vmem:[#allocation2 + $0x128] sm:$0xf0]  ;;  %v2204_v37 = vor.u32 %v3011_v29, %v2201_v31  ;;  %v2497_v6 = vld [vmem:[#allocation2 + $0x2f8] sm:$0xf0]  ;;  %v3067_v14 = vld [vmem:[#allocation2 + $0x264] sm:$0xf]  ;;  %v2436_v16 = vor.u32 %v3069_v2, %v2433_v3 }
  0x60   :  { %1102 = vmatpush.bf16.msra.mxu2 %v2308_v34  ;;  %1068 = vmatmul.bf16.vlgmr.msrb.gmra.mxu3 %v3566_v47  ;;  %v3043_v34 = vld [vmem:[#allocation2 + $0x1a4] sm:$0xf]  ;;  %v2561_v8 = vld [vmem:[#allocation2 + $0x378] sm:$0xf0]  ;;  %v2489_v20 = vld [vmem:[#allocation2 + $0x2e8] sm:$0xf0] }
  0x61   :  { %1116 = vmatpush.bf16.msra.mxu3 %v2372_v38  ;;  %v2268_v38 = vor.u32 %v3027_v32, %v2265_v33  ;;  %v2332_v45 = vor.u32 %v3043_v34, %v2329_v35  ;;  %v3083_v19 = vld [vmem:[#allocation2 + $0x2e4] sm:$0xf]  ;;  %v2564_v22 = vor.u32 %v3101_v7, %v2561_v8  ;;  %v2617_v27 = vld [vmem:[#allocation2 + $0x3e8] sm:$0xf0]  ;;  %v3065_v31 = vld [vmem:[#allocation2 + $0x254] sm:$0xf] }
  0x62   :  { %1075 = vmatpush.bf16.msra.mxu0 %v2172_v48  ;;  %v3025_v48 = vld [vmem:[#allocation2 + $0x114] sm:$0xf]  ;;  %v3099_v23 = vld [vmem:[#allocation2 + $0x364] sm:$0xf]  ;;  %v2492_v29 = vor.u32 %v3083_v19, %v2489_v20  ;;  %v2417_v32 = vld [vmem:[#allocation2 + $0x258] sm:$0xf0] }
  0x63   :  { %1089 = vmatpush.bf16.msra.mxu1 %v2236_v49  ;;  %v2257_v49 = vld [vmem:[#allocation2 + $0x118] sm:$0xf0]  ;;  %v3081_v33 = vld [vmem:[#allocation2 + $0x2d4] sm:$0xf]  ;;  %v2420_v41 = vor.u32 %v3065_v31, %v2417_v32  ;;  %v3063_v46 = vld [vmem:[#allocation2 + $0x244] sm:$0xf] }
  0x64   :  { %1103 = vmatpush.bf16.msra.mxu2 %v2300_v50  ;;  %v3041_v50 = vld [vmem:[#allocation2 + $0x194] sm:$0xf]  ;;  %v2260_v56 = vor.u32 %v3025_v48, %v2257_v49  ;;  %v2481_v35 = vld [vmem:[#allocation2 + $0x2d8] sm:$0xf0]  ;;  %v2409_v48 = vld [vmem:[#allocation2 + $0x248] sm:$0xf0] }
  0x65   :  { %1117 = vmatpush.bf16.msra.mxu3 %v2364_v54  ;;  %v2121_v54 = vld [vmem:[#allocation2 + $0x8] sm:$0xf0]  ;;  %v2609_v40 = vld [vmem:[#allocation2 + $0x3d8] sm:$0xf0]  ;;  %v2484_v42 = vor.u32 %v3081_v33, %v2481_v35  ;;  %v3077_v57 = vld [vmem:[#allocation2 + $0x2b4] sm:$0xf] }
  0x66   :  { %1076 = vmatpush.bf16.msra.mxu0 %v2164_v61  ;;  %v2324_v61 = vor.u32 %v3041_v50, %v2321_v51  ;;  %v2124_v5 = vor.u32 %v2991_v53, %v2121_v54  ;;  %v2473_v50 = vld [vmem:[#allocation2 + $0x2c8] sm:$0xf0]  ;;  %v3095_v51 = vld [vmem:[#allocation2 + $0x344] sm:$0xf]  ;;  %v3057_v19 = vld [vmem:[#allocation2 + $0x214] sm:$0xf] }
  0x67   :  { %1090 = vmatpush.bf16.msra.mxu1 %v2228_v62  ;;  %v2249_v62 = vld [vmem:[#allocation2 + $0x108] sm:$0xf0]  ;;  %v3111_v53 = vld [vmem:[#allocation2 + $0x3c4] sm:$0xf]  ;;  %v2385_v20 = vld [vmem:[#allocation2 + $0x218] sm:$0xf0] }
  0x68   :  { %1104 = vmatpush.bf16.msra.mxu2 %v2292_v63  ;;  %v3039_v63 = vld [vmem:[#allocation2 + $0x184] sm:$0xf]  ;;  %v2377_v32 = vld [vmem:[#allocation2 + $0x208] sm:$0xf0] }
  0x69   :  { %1118 = vmatpush.bf16.msra.mxu3 %v2356_v4  ;;  %v3085_v4 = vld [vmem:[#allocation2 + $0x2f4] sm:$0xf]  ;;  %v2316_v15 = vor.u32 %v3039_v63, %v2313_v0  ;;  %v2593_v0 = vld [vmem:[#allocation2 + $0x3b8] sm:$0xf0]  ;;  %v3075_v7 = vld [vmem:[#allocation2 + $0x2a4] sm:$0xf] }
  0x6a   :  { %1077 = vmatpush.bf16.msra.mxu0 %v2156_v11  ;;  %v2252_v11 = vor.u32 %v3023_v60, %v2249_v62  ;;  %v2500_v21 = vor.u32 %v3085_v4, %v2497_v6  ;;  %v2465_v60 = vld [vmem:[#allocation2 + $0x2b8] sm:$0xf0]  ;;  %v3109_v63 = vld [vmem:[#allocation2 + $0x3b4] sm:$0xf]  ;;  %v2393_v6 = vld [vmem:[#allocation2 + $0x228] sm:$0xf0] }
  0x6b   :  { %1091 = vmatpush.bf16.msra.mxu1 %v2220_v12  ;;  %v3117_v12 = vld [vmem:[#allocation2 + $0x3f4] sm:$0xf]  ;;  %v2529_v62 = vld [vmem:[#allocation2 + $0x338] sm:$0xf0]  ;;  %v2468_v3 = vor.u32 %v3077_v57, %v2465_v60  ;;  %v2596_v8 = vor.u32 %v3109_v63, %v2593_v0  ;;  %v3055_v31 = vld [vmem:[#allocation2 + $0x204] sm:$0xf] }
  0x6c   :  { %1105 = vmatpush.bf16.msra.mxu2 %v2284_v13  ;;  %v2625_v13 = vld [vmem:[#allocation2 + $0x3f8] sm:$0xf0]  ;;  %v3071_v33 = vld [vmem:[#allocation2 + $0x284] sm:$0xf]  ;;  %v2441_v35 = vld [vmem:[#allocation2 + $0x288] sm:$0xf0] }
  0x6d   :  { %1119 = vmatpush.bf16.msra.mxu3 %v2348_v18  ;;  %v2425_v18 = vld [vmem:[#allocation2 + $0x268] sm:$0xf0] }
  0x6e   :  { %1078 = vmatpush.bf16.msra.mxu0 %v2148_v24  ;;  %v2553_v24 = vld [vmem:[#allocation2 + $0x368] sm:$0xf0]  ;;  %v2428_v28 = vor.u32 %v3067_v14, %v2425_v18 }
  0x6f   :  { %1092 = vmatpush.bf16.msra.mxu1 %v2212_v25  ;;  %v2628_v25 = vor.u32 %v3117_v12, %v2625_v13  ;;  %v2521_v12 = vld [vmem:[#allocation2 + $0x328] sm:$0xf0]  ;;  %v3107_v13 = vld [vmem:[#allocation2 + $0x3a4] sm:$0xf] }
  0x70   :  { %1106 = vmatpush.bf16.msra.mxu2 %v2276_v26  ;;  %v3115_v26 = vld [vmem:[#allocation2 + $0x3e4] sm:$0xf]  ;;  %v2585_v14 = vld [vmem:[#allocation2 + $0x3a8] sm:$0xf0] }
  0x71   :  { %1120 = vmatpush.bf16.msra.mxu3 %v2340_v30  ;;  %v2556_v30 = vor.u32 %v3099_v23, %v2553_v24  ;;  %v2620_v34 = vor.u32 %v3115_v26, %v2617_v27  ;;  %v2449_v23 = vld [vmem:[#allocation2 + $0x298] sm:$0xf0]  ;;  %v3089_v24 = vld [vmem:[#allocation2 + $0x314] sm:$0xf] }
  0x72   :  { %1079 = vmatpush.bf16.msra.mxu0 %v2140_v36  ;;  %v3097_v36 = vld [vmem:[#allocation2 + $0x354] sm:$0xf]  ;;  %v2577_v27 = vld [vmem:[#allocation2 + $0x398] sm:$0xf0] }
  0x73   :  { %1093 = vmatpush.bf16.msra.mxu1 %v2204_v37  ;;  %v2545_v37 = vld [vmem:[#allocation2 + $0x358] sm:$0xf0]  ;;  %v3105_v26 = vld [vmem:[#allocation2 + $0x394] sm:$0xf] }
  0x74   :  { %1107 = vmatpush.bf16.msra.mxu2 %v2268_v38  ;;  %v3113_v38 = vld [vmem:[#allocation2 + $0x3d4] sm:$0xf] }
  0x75   :  { %1121 = vmatpush.bf16.msra.mxu3 %v2332_v45  ;;  %v2548_v45 = vor.u32 %v3097_v36, %v2545_v37  ;;  %v2612_v49 = vor.u32 %v3113_v38, %v2609_v40  ;;  %v3087_v36 = vld [vmem:[#allocation2 + $0x304] sm:$0xf]  ;;  %v2505_v37 = vld [vmem:[#allocation2 + $0x308] sm:$0xf0] }
  0x76   :  { %1080 = vmatpush.bf16.msra.mxu0 %v2132_v52  ;;  %v2537_v52 = vld [vmem:[#allocation2 + $0x348] sm:$0xf0]  ;;  %v3103_v38 = vld [vmem:[#allocation2 + $0x384] sm:$0xf] }
  0x77   :  { %1094 = vmatpush.bf16.msra.mxu1 %v2196_v55  ;;  %v3061_v55 = vld [vmem:[#allocation2 + $0x234] sm:$0xf]  ;;  %v2569_v40 = vld [vmem:[#allocation2 + $0x388] sm:$0xf0] }
  0x78   :  { %1108 = vmatpush.bf16.msra.mxu2 %v2260_v56  ;;  %v2401_v56 = vld [vmem:[#allocation2 + $0x238] sm:$0xf0] }
  0x79   :  { %1122 = vmatpush.bf16.msra.mxu3 %v2324_v61  ;;  %v3093_v61 = vld [vmem:[#allocation2 + $0x334] sm:$0xf]  ;;  %v2404_v2 = vor.u32 %v3061_v55, %v2401_v56 }
  0x7a   :  { %1081 = vmatpush.bf16.msra.mxu0 %v2124_v5  ;;  %v2532_v4 = vor.u32 %v3093_v61, %v2529_v62  ;;  %v3059_v5 = vld [vmem:[#allocation2 + $0x224] sm:$0xf] }
  0x7b   :  { %1095 = vmatpush.bf16.msra.mxu1 %v2188_v9  ;;  %v2457_v9 = vld [vmem:[#allocation2 + $0x2a8] sm:$0xf0] }
  0x7c   :  { %1109 = vmatpush.bf16.msra.mxu2 %v2252_v11  ;;  %v3091_v11 = vld [vmem:[#allocation2 + $0x324] sm:$0xf] }
  0x7d   :  { %1123 = vmatpush.bf16.msra.mxu3 %v2316_v15  ;;  %1082 = vmatmul.bf16.vlgmr.msra.gmra.mxu0 %v3509_v58  ;;  %v2601_v58 = vld [vmem:[#allocation2 + $0x3c8] sm:$0xf0]  ;;  %v2396_v15 = vor.u32 %v3059_v5, %v2393_v6  ;;  %v2524_v18 = vor.u32 %v3091_v11, %v2521_v12 }
  0x7e   :  { %1130 = vmatpush.bf16.msrb.mxu0 %v2436_v16  ;;  %1096 = vmatmul.bf16.vlgmr.msra.gmra.mxu1 %v3527_v10  ;;  %v2540_v10 = vor.u32 %v3095_v51, %v2537_v52  ;;  %v2604_v59 = vor.u32 %v3111_v53, %v2601_v58  ;;  %v2460_v16 = vor.u32 %v3075_v7, %v2457_v9  ;;  %v3120_v53 = vld [vmem:[%s3773_s3 + $0x8] sm:$0xff] }
  0x7f   :  { %1144 = vmatpush.bf16.msrb.mxu1 %v2500_v21  ;;  %1110 = vmatmul.bf16.vlgmr.msra.gmra.mxu2 %v3514_v1  ;;  %v3079_v1 = vld [vmem:[#allocation2 + $0x2c4] sm:$0xf]  ;;  %v3073_v21 = vld [vmem:[#allocation2 + $0x294] sm:$0xf] }
  0x80   :  { %1158 = vmatpush.bf16.msrb.mxu2 %v2564_v22  ;;  %1124 = vmatmul.bf16.vlgmr.msra.gmra.mxu3 %v3532_v17  ;;  %v2412_v17 = vor.u32 %v3063_v46, %v2409_v48  ;;  %v2476_v54 = vor.u32 %v3079_v1, %v2473_v50  ;;  %v2588_v22 = vor.u32 %v3107_v13, %v2585_v14  ;;  %v3126_v48 = vld [vmem:[%s3773_s3 + $0x38] sm:$0xff]  ;;  %v3125_v1 = vld [vmem:[%s3773_s3 + $0x30] sm:$0xff]  ;;  %v3598_v50 = vld [vmem:[#allocation4] sm:$0x3] }
  0x81   :  { %1172 = vmatpush.bf16.msrb.mxu3 %v2628_v25  ;;  %v2513_v25 = vld [vmem:[#allocation2 + $0x318] sm:$0xf0]  ;;  %v2572_v46 = vor.u32 %v3103_v38, %v2569_v40  ;;  %v278_v52 = vperm.slane %v3598_v50, 0 }
  0x82   :  { %1131 = vmatpush.bf16.msrb.mxu0 %v2428_v28  ;;  %v2388_v28 = vor.u32 %v3057_v19, %v2385_v20 }
  0x83   :  { %1145 = vmatpush.bf16.msrb.mxu1 %v2492_v29  ;;  %v2452_v29 = vor.u32 %v3073_v21, %v2449_v23 }
  0x84   :  { %1159 = vmatpush.bf16.msrb.mxu2 %v2556_v30  ;;  %v2516_v30 = vor.u32 %v3089_v24, %v2513_v25 }
  0x85   :  { %1173 = vmatpush.bf16.msrb.mxu3 %v2620_v34  ;;  %v2580_v34 = vor.u32 %v3105_v26, %v2577_v27  ;;  %v3132_v27 = vld [vmem:[%s3773_s3 + $0x68] sm:$0xff] }
  0x86   :  { %1132 = vmatpush.bf16.msrb.mxu0 %v2420_v41  ;;  %v2380_v41 = vor.u32 %v3055_v31, %v2377_v32  ;;  %v3128_v32 = vld [vmem:[%s3773_s3 + $0x48] sm:$0xff] }
  0x87   :  { %1146 = vmatpush.bf16.msrb.mxu1 %v2484_v42  ;;  %v2444_v42 = vor.u32 %v3071_v33, %v2441_v35  ;;  %v3127_v35 = vld [vmem:[%s3773_s3 + $0x40] sm:$0xff] }
  0x88   :  { %1160 = vmatpush.bf16.msrb.mxu2 %v2548_v45  ;;  %v2508_v45 = vor.u32 %v3087_v36, %v2505_v37 }
  0x89   :  { %1174 = vmatpush.bf16.msrb.mxu3 %v2612_v49  ;;  %v3121_v49 = vld [vmem:[%s3773_s3 + $0x10] sm:$0xff] }
  0x8a   :  { %1133 = vmatpush.bf16.msrb.mxu0 %v2412_v17 }
  0x8b   :  { %1147 = vmatpush.bf16.msrb.mxu1 %v2476_v54 }
  0x8c   :  { %1161 = vmatpush.bf16.msrb.mxu2 %v2540_v10  ;;  %v3119_v10 = vld [vmem:[%s3773_s3] sm:$0xff] }
  0x8d   :  { %1175 = vmatpush.bf16.msrb.mxu3 %v2604_v59 }
  0x8e   :  { %1134 = vmatpush.bf16.msrb.mxu0 %v2404_v2 }
  0x8f   :  { %1148 = vmatpush.bf16.msrb.mxu1 %v2468_v3 }
  0x90   :  { %1162 = vmatpush.bf16.msrb.mxu2 %v2532_v4 }
  0x91   :  { %1176 = vmatpush.bf16.msrb.mxu3 %v2596_v8 }
  0x92   :  { %1135 = vmatpush.bf16.msrb.mxu0 %v2396_v15 }
  0x93   :  { %1149 = vmatpush.bf16.msrb.mxu1 %v2460_v16 }
  0x94   :  { %1163 = vmatpush.bf16.msrb.mxu2 %v2524_v18  ;;  %v3134_v18 = vld [vmem:[%s3773_s3 + $0x78] sm:$0xff] }
  0x95   :  { %1177 = vmatpush.bf16.msrb.mxu3 %v2588_v22  ;;  %v3133_v22 = vld [vmem:[%s3773_s3 + $0x70] sm:$0xff] }
  0x96   :  { %1136 = vmatpush.bf16.msrb.mxu0 %v2388_v28  ;;  %v3131_v28 = vld [vmem:[%s3773_s3 + $0x60] sm:$0xff] }
  0x97   :  { %1150 = vmatpush.bf16.msrb.mxu1 %v2452_v29  ;;  %v3130_v29 = vld [vmem:[%s3773_s3 + $0x58] sm:$0xff] }
  0x98   :  { %1164 = vmatpush.bf16.msrb.mxu2 %v2516_v30  ;;  %v3129_v30 = vld [vmem:[%s3773_s3 + $0x50] sm:$0xff] }
  0x99   :  { %1178 = vmatpush.bf16.msrb.mxu3 %v2580_v34  ;;  %v279_v34 = vperm.slane %v3598_v50, 1 }
  0x9a   :  { %1137 = vmatpush.bf16.msrb.mxu0 %v2380_v41 }
  0x9b   :  { %1151 = vmatpush.bf16.msrb.mxu1 %v2444_v42 }
  0x9c   :  { %1165 = vmatpush.bf16.msrb.mxu2 %v2508_v45 }
  0x9d   :  { %1179 = vmatpush.bf16.msrb.mxu3 %v2572_v46  ;;  %1138 = vmatmul.bf16.vlgmr.msrb.gmra.mxu0 %v3560_v39  ;;  %v3124_v39 = vld [vmem:[%s3773_s3 + $0x28] sm:$0xff] }
  0x9e   :  { %1152 = vmatmul.bf16.vlgmr.msrb.gmra.mxu1 %v3564_v44  ;;  %1324 = vmatpush.bf16.msra.mxu0 %v3126_v48  ;;  %v3122_v44 = vld [vmem:[%s3773_s3 + $0x18] sm:$0xff] }
  0x9f   :  { %1166 = vmatmul.bf16.vlgmr.msrb.gmra.mxu2 %v3562_v43  ;;  %v3123_v43 = vld [vmem:[%s3773_s3 + $0x20] sm:$0xff]  ;;  %1338 = vmatpush.bf16.msra.mxu1 %v3134_v18  ;;  %v3146_v18 = vld [vmem:[%s3775_s5 + $0x54] sm:$0xf0] }
  0xa0   :  { %1180 = vmatmul.bf16.vlgmr.msrb.gmra.mxu3 %v3566_v47 }
  0xa2   :  { %1325 = vmatpush.bf16.msra.mxu0 %v3125_v1 }
  0xa3   :  { %1339 = vmatpush.bf16.msra.mxu1 %v3133_v22 }
  0xa6   :  { %1326 = vmatpush.bf16.msra.mxu0 %v3124_v39 }
  0xa7   :  { %1340 = vmatpush.bf16.msra.mxu1 %v3132_v27 }
  0xaa   :  { %1327 = vmatpush.bf16.msra.mxu0 %v3123_v43 }
  0xab   :  { %1341 = vmatpush.bf16.msra.mxu1 %v3131_v28 }
  0xae   :  { %1328 = vmatpush.bf16.msra.mxu0 %v3122_v44 }
  0xaf   :  { %1342 = vmatpush.bf16.msra.mxu1 %v3130_v29  ;;  %v2719_v29 = vld [vmem:[%s3775_s5 + $0x30] sm:$0xf] }
  0xb2   :  { %1329 = vmatpush.bf16.msra.mxu0 %v3121_v49 }
  0xb3   :  { %1343 = vmatpush.bf16.msra.mxu1 %v3129_v30  ;;  %v3142_v30 = vld [vmem:[%s3775_s5 + $0x34] sm:$0xf0] }
  0xb6   :  { %1330 = vmatpush.bf16.msra.mxu0 %v3120_v53 }
  0xb7   :  { %1344 = vmatpush.bf16.msra.mxu1 %v3128_v32  ;;  %v2720_v32 = vor.u32 %v3142_v30, %v2719_v29  ;;  %v2863_v29 = vld [vmem:[#allocation9 + $0x50] sm:$0xf]  ;;  %v3178_v30 = vld [vmem:[#allocation9 + $0x54] sm:$0xf0] }
  0xba   :  { %v971_v47 = vpop.f32.mrf.mxu0  ;;  %1331 = vmatpush.bf16.msra.mxu0 %v3119_v10 }
  0xbb   :  { %v985_v51 = vpop.f32.mrf.mxu1  ;;  %v972_v17 = vadd.f32 %v971_v47, %v278_v52  ;;  %1345 = vmatpush.bf16.msra.mxu1 %v3127_v35  ;;  %v2711_v35 = vld [vmem:[%s3775_s5 + $0x20] sm:$0xf] }
  0xbd   :  { %v986_v57 = vadd.f32 %v985_v51, %v972_v17 }
  0xc2   :  { %v999_v58 = vpop.f32.mrf.mxu2  ;;  %v973_v55 = vpop.f32.mrf.mxu0 }
  0xc3   :  { %v1013_v54 = vpop.f32.mrf.mxu3  ;;  %v987_v56 = vpop.f32.mrf.mxu1  ;;  %v974_v59 = vadd.f32 %v973_v55, %v278_v52  ;;  %v1000_v60 = vadd.f32 %v999_v58, %v986_v57 }
  0xc5   :  { %v988_v62 = vadd.f32 %v987_v56, %v974_v59  ;;  %v1014_v0 = vadd.f32 %v1013_v54, %v1000_v60 }
  0xca   :  { %v1001_v61 = vpop.f32.mrf.mxu2 }
  0xcb   :  { %v1015_v63 = vpop.f32.mrf.mxu3  ;;  %v1002_v4 = vadd.f32 %v1001_v61, %v988_v62 }
  0xcd   :  { %v1016_v6 = vadd.f32 %v1015_v63, %v1002_v4  ;;  %v3150_v4 = vld [vmem:[%s3775_s5 + $0x74] sm:$0xf0] }
  0xda   :  { %v1027_v2 = vpop.f32.mrf.mxu0 }
  0xdb   :  { %v1041_v3 = vpop.f32.mrf.mxu1  ;;  %v1028_v5 = vadd.f32 %v1027_v2, %v1014_v0 }
  0xdd   :  { %v1042_v8 = vadd.f32 %v1041_v3, %v1028_v5  ;;  %v2751_v3 = vld [vmem:[%s3775_s5 + $0x70] sm:$0xf]  ;;  %v3149_v5 = vld [vmem:[%s3775_s5 + $0x74] sm:$0xf] }
  0xe2   :  { %v1055_v7 = vpop.f32.mrf.mxu2  ;;  %v1029_v9 = vpop.f32.mrf.mxu0 }
  0xe3   :  { %v1069_v11 = vpop.f32.mrf.mxu3  ;;  %v1030_v12 = vadd.f32 %v1029_v9, %v1016_v6  ;;  %v1043_v13 = vpop.f32.mrf.mxu1  ;;  %v1056_v14 = vadd.f32 %v1055_v7, %v1042_v8  ;;  %v2752_v6 = vor.u32 %v3150_v4, %v2751_v3  ;;  %v2753_v7 = vld [vmem:[%s3775_s5 + $0x78] sm:$0xf0]  ;;  %v2743_v8 = vld [vmem:[%s3775_s5 + $0x60] sm:$0xf]  ;;  %v3148_v9 = vld [vmem:[%s3775_s5 + $0x64] sm:$0xf0] }
  0xe5   :  { %v1044_v15 = vadd.f32 %v1043_v13, %v1030_v12  ;;  %v1070_v19 = vadd.f32 %v1069_v11, %v1056_v14  ;;  %v2756_v11 = vor.u32 %v3149_v5, %v2753_v7  ;;  %v3147_v12 = vld [vmem:[%s3775_s5 + $0x64] sm:$0xf]  ;;  %v2745_v13 = vld [vmem:[%s3775_s5 + $0x68] sm:$0xf0]  ;;  %1457 = vmatpush.bf16.msra.mxu2 %v2752_v6  ;;  %v2744_v14 = vor.u32 %v3148_v9, %v2743_v8  ;;  %v3154_v7 = vld [vmem:[#allocation7 + $0x18] sm:$0xff] }
  0xe6   :  { %v3162_v8 = vld [vmem:[#allocation7 + $0x58] sm:$0xff]  ;;  %v3153_v9 = vld [vmem:[#allocation7 + $0x10] sm:$0xff] }
  0xe7   :  { %v1186_v24 = vmax.f32 %v1070_v19, 0.0  ;;  %1471 = vmatpush.bf16.msra.mxu3 %v2756_v11  ;;  %v3145_v19 = vld [vmem:[%s3775_s5 + $0x54] sm:$0xf] }
  0xe8   :  { %v3161_v11 = vld [vmem:[#allocation7 + $0x50] sm:$0xff] }
  0xe9   :  { %1458 = vmatpush.bf16.msra.mxu2 %v2744_v14  ;;  %v3151_v14 = vld [vmem:[#allocation7] sm:$0xff] }
  0xea   :  { %v1057_v16 = vpop.f32.mrf.mxu2 }
  0xeb   :  { %v1058_v20 = vadd.f32 %v1057_v16, %v1044_v15  ;;  %v1071_v21 = vpop.f32.mrf.mxu3  ;;  %v2748_v15 = vor.u32 %v3147_v12, %v2745_v13  ;;  %v2735_v16 = vld [vmem:[%s3775_s5 + $0x50] sm:$0xf] }
  0xec   :  { %v3152_v12 = vld [vmem:[#allocation7 + $0x8] sm:$0xff] }
  0xed   :  { %v1072_v23 = vadd.f32 %v1071_v21, %v1058_v20  ;;  %v2737_v20 = vld [vmem:[%s3775_s5 + $0x58] sm:$0xf0]  ;;  %v2736_v21 = vor.u32 %v3146_v18, %v2735_v16  ;;  %1472 = vmatpush.bf16.msra.mxu3 %v2748_v15  ;;  %v3160_v13 = vld [vmem:[#allocation7 + $0x48] sm:$0xff]  ;;  %v3159_v15 = vld [vmem:[#allocation7 + $0x40] sm:$0xff] }
  0xee   :  { %v2740_v22 = vor.u32 %v3145_v19, %v2737_v20  ;;  %v2879_v16 = vld [vmem:[#allocation9 + $0x70] sm:$0xf]  ;;  %v3182_v18 = vld [vmem:[#allocation9 + $0x74] sm:$0xf0]  ;;  %v3181_v19 = vld [vmem:[#allocation9 + $0x74] sm:$0xf] }
  0xef   :  { %v1188_v25 = vmax.f32 %v1072_v23, 0.0  ;;  %v2727_v23 = vld [vmem:[%s3775_s5 + $0x40] sm:$0xf]  ;;  %1459 = vmatpush.bf16.msra.mxu2 %v2736_v21  ;;  %v2880_v20 = vor.u32 %v3182_v18, %v2879_v16 }
  0xf0   :  { %v2881_v21 = vld [vmem:[#allocation9 + $0x78] sm:$0xf0] }
  0xf1   :  { %v1190_v26 = vpack.c.bf16 %v1188_v25, %v1186_v24  ;;  %v3144_v24 = vld [vmem:[%s3775_s5 + $0x44] sm:$0xf0]  ;;  %v3143_v25 = vld [vmem:[%s3775_s5 + $0x44] sm:$0xf]  ;;  %1473 = vmatpush.bf16.msra.mxu3 %v2740_v22  ;;  %v3190_v18 = vld [vmem:[#allocation10 + $0x38] sm:$0xff] }
  0xf2   :  { %v2728_v27 = vor.u32 %v3144_v24, %v2727_v23  ;;  %v2871_v22 = vld [vmem:[#allocation9 + $0x60] sm:$0xf]  ;;  %v3180_v23 = vld [vmem:[#allocation9 + $0x64] sm:$0xf0]  ;;  %v2884_v24 = vor.u32 %v3181_v19, %v2881_v21  ;;  %v3198_v19 = vld [vmem:[#allocation10 + $0x78] sm:$0xff] }
  0xf3   :  { %1332 = vmatmul.bf16.vlgmr.msra.gmra.mxu0 %v1190_v26  ;;  %v2729_v26 = vld [vmem:[%s3775_s5 + $0x48] sm:$0xf0]  ;;  %v3197_v21 = vld [vmem:[#allocation10 + $0x70] sm:$0xff] }
  0xf4   :  { %v2732_v28 = vor.u32 %v3143_v25, %v2729_v26  ;;  %1460 = vmatpush.bf16.msra.mxu2 %v2728_v27  ;;  %v3179_v25 = vld [vmem:[#allocation9 + $0x64] sm:$0xf]  ;;  %v2873_v26 = vld [vmem:[#allocation9 + $0x68] sm:$0xf0]  ;;  %v2872_v27 = vor.u32 %v3180_v23, %v2871_v22 }
  0xf5   :  { %v3188_v22 = vld [vmem:[#allocation10 + $0x28] sm:$0xff] }
  0xf6   :  { %1474 = vmatpush.bf16.msra.mxu3 %v2732_v28  ;;  %v2876_v28 = vor.u32 %v3179_v25, %v2873_v26  ;;  %v3196_v23 = vld [vmem:[#allocation10 + $0x68] sm:$0xff]  ;;  %v3195_v25 = vld [vmem:[#allocation10 + $0x60] sm:$0xff] }
  0xf8   :  { %1461 = vmatpush.bf16.msra.mxu2 %v2720_v32  ;;  %v2865_v32 = vld [vmem:[#allocation9 + $0x58] sm:$0xf0] }
  0xfa   :  { %v1083_v31 = vpop.f32.mrf.mxu0 }
  0xfb   :  { %v1097_v33 = vpop.f32.mrf.mxu1  ;;  %v1084_v38 = vadd.f32 %v1083_v31, %v279_v34  ;;  %v3141_v31 = vld [vmem:[%s3775_s5 + $0x34] sm:$0xf] }
  0xfd   :  { %v1098_v42 = vadd.f32 %v1097_v33, %v1084_v38  ;;  %v2721_v33 = vld [vmem:[%s3775_s5 + $0x38] sm:$0xf0] }
 0x102   :  { %v1111_v36 = vpop.f32.mrf.mxu2  ;;  %v1085_v40 = vpop.f32.mrf.mxu0 }
 0x103   :  { %v1125_v37 = vpop.f32.mrf.mxu3  ;;  %v1099_v41 = vpop.f32.mrf.mxu1  ;;  %v1086_v45 = vadd.f32 %v1085_v40, %v279_v34  ;;  %v1112_v48 = vadd.f32 %v1111_v36, %v1098_v42  ;;  %v2724_v34 = vor.u32 %v3141_v31, %v2721_v33  ;;  %v3140_v36 = vld [vmem:[%s3775_s5 + $0x24] sm:$0xf0]  ;;  %v2713_v40 = vld [vmem:[%s3775_s5 + $0x28] sm:$0xf0]  ;;  %v2703_v42 = vld [vmem:[%s3775_s5 + $0x10] sm:$0xf]  ;;  %v2864_v33 = vor.u32 %v3178_v30, %v2863_v29 }
 0x104   :  { %v2712_v38 = vor.u32 %v3140_v36, %v2711_v35  ;;  %v3177_v31 = vld [vmem:[#allocation9 + $0x54] sm:$0xf]  ;;  %v2855_v35 = vld [vmem:[#allocation9 + $0x40] sm:$0xf]  ;;  %v3176_v36 = vld [vmem:[#allocation9 + $0x44] sm:$0xf0] }
 0x105   :  { %v1100_v1 = vadd.f32 %v1099_v41, %v1086_v45  ;;  %v1126_v47 = vadd.f32 %v1125_v37, %v1112_v48  ;;  %1475 = vmatpush.bf16.msra.mxu3 %v2724_v34  ;;  %v3139_v37 = vld [vmem:[%s3775_s5 + $0x24] sm:$0xf]  ;;  %v3138_v45 = vld [vmem:[%s3775_s5 + $0x14] sm:$0xf0]  ;;  %v2868_v34 = vor.u32 %v3177_v31, %v2865_v32 }
 0x106   :  { %v2716_v41 = vor.u32 %v3139_v37, %v2713_v40  ;;  %1462 = vmatpush.bf16.msra.mxu2 %v2712_v38  ;;  %v2704_v48 = vor.u32 %v3138_v45, %v2703_v42  ;;  %v3175_v37 = vld [vmem:[#allocation9 + $0x44] sm:$0xf]  ;;  %v2857_v38 = vld [vmem:[#allocation9 + $0x48] sm:$0xf0]  ;;  %v2856_v40 = vor.u32 %v3176_v36, %v2855_v35  ;;  %v1371_v42 = vld [vmem:[%s3776_s6] sm:$0x3] }
 0x109   :  { %1476 = vmatpush.bf16.msra.mxu3 %v2716_v41  ;;  %v2860_v41 = vor.u32 %v3175_v37, %v2857_v38  ;;  %v3186_v38 = vld [vmem:[#allocation10 + $0x18] sm:$0xff] }
 0x10a   :  { %v1113_v46 = vpop.f32.mrf.mxu2  ;;  %1463 = vmatpush.bf16.msra.mxu2 %v2704_v48  ;;  %v1373_v48 = vperm.slane %v1371_v42, 0 }
 0x10b   :  { %v1127_v39 = vpop.f32.mrf.mxu3  ;;  %v1114_v49 = vadd.f32 %v1113_v46, %v1100_v1  ;;  %v3137_v46 = vld [vmem:[%s3775_s5 + $0x14] sm:$0xf]  ;;  %v2705_v1 = vld [vmem:[%s3775_s5 + $0x18] sm:$0xf0] }
 0x10d   :  { %v1128_v52 = vadd.f32 %v1127_v39, %v1114_v49  ;;  %v2708_v39 = vor.u32 %v3137_v46, %v2705_v1  ;;  %v1374_v1 = vperm.slane %v1371_v42, 1  ;;  %v3193_v42 = vld [vmem:[#allocation10 + $0x50] sm:$0xff] }
 0x10f   :  { %1477 = vmatpush.bf16.msra.mxu3 %v2708_v39 }
 0x11a   :  { %v1139_v43 = vpop.f32.mrf.mxu0 }
 0x11b   :  { %v1153_v44 = vpop.f32.mrf.mxu1  ;;  %v1140_v50 = vadd.f32 %v1139_v43, %v1126_v47  ;;  %v2695_v43 = vld [vmem:[%s3775_s5] sm:$0xf]  ;;  %v3135_v47 = vld [vmem:[%s3775_s5 + $0x4] sm:$0xf] }
 0x11d   :  { %v1154_v17 = vadd.f32 %v1153_v44, %v1140_v50  ;;  %v3136_v44 = vld [vmem:[%s3775_s5 + $0x4] sm:$0xf0]  ;;  %v2697_v50 = vld [vmem:[%s3775_s5 + $0x8] sm:$0xf0] }
 0x11e   :  { %v2696_v49 = vor.u32 %v3136_v44, %v2695_v43 }
 0x120   :  { %1464 = vmatpush.bf16.msra.mxu2 %v2696_v49 }
 0x122   :  { %v1167_v51 = vpop.f32.mrf.mxu2  ;;  %v1141_v58 = vpop.f32.mrf.mxu0 }
 0x123   :  { %v1181_v53 = vpop.f32.mrf.mxu3  ;;  %v1142_v54 = vadd.f32 %v1141_v58, %v1128_v52  ;;  %v1168_v10 = vadd.f32 %v1167_v51, %v1154_v17  ;;  %v1155_v55 = vpop.f32.mrf.mxu1  ;;  %v2700_v51 = vor.u32 %v3135_v47, %v2697_v50  ;;  %v3158_v52 = vld [vmem:[#allocation7 + $0x38] sm:$0xff]  ;;  %v3157_v58 = vld [vmem:[#allocation7 + $0x30] sm:$0xff] }
 0x124   :  { %1623 = vmatpush.bf16.msrb.mxu0 %v3158_v52  ;;  %v3165_v17 = vld [vmem:[#allocation7 + $0x70] sm:$0xff]  ;;  %1756 = vmatpush.bf16.msrb.mxu2 %v2880_v20 }
 0x125   :  { %v1156_v56 = vadd.f32 %v1155_v55, %v1142_v54  ;;  %v1182_v59 = vadd.f32 %v1181_v53, %v1168_v10  ;;  %1478 = vmatpush.bf16.msra.mxu3 %v2700_v51  ;;  %v3166_v53 = vld [vmem:[#allocation7 + $0x78] sm:$0xff]  ;;  %v3156_v54 = vld [vmem:[#allocation7 + $0x28] sm:$0xff]  ;;  %v3155_v55 = vld [vmem:[#allocation7 + $0x20] sm:$0xff] }
 0x126   :  { %1637 = vmatpush.bf16.msrb.mxu1 %v3166_v53  ;;  %v3164_v10 = vld [vmem:[#allocation7 + $0x68] sm:$0xff]  ;;  %v3189_v20 = vld [vmem:[#allocation10 + $0x30] sm:$0xff] }
 0x127   :  { %v1187_v63 = vmax.f32 %v1182_v59, 0.0 }
 0x128   :  { %1624 = vmatpush.bf16.msrb.mxu0 %v3157_v58  ;;  %1757 = vmatpush.bf16.msrb.mxu2 %v2872_v27 }
 0x129   :  { %1770 = vmatpush.bf16.msrb.mxu3 %v2884_v24  ;;  %v3187_v24 = vld [vmem:[#allocation10 + $0x20] sm:$0xff] }
 0x12a   :  { %v1169_v57 = vpop.f32.mrf.mxu2  ;;  %1638 = vmatpush.bf16.msrb.mxu1 %v3165_v17 }
 0x12b   :  { %v1170_v60 = vadd.f32 %v1169_v57, %v1156_v56  ;;  %v1183_v61 = vpop.f32.mrf.mxu3  ;;  %v3163_v56 = vld [vmem:[#allocation7 + $0x60] sm:$0xff] }
 0x12c   :  { %1625 = vmatpush.bf16.msrb.mxu0 %v3156_v54  ;;  %1758 = vmatpush.bf16.msrb.mxu2 %v2864_v33 }
 0x12d   :  { %v1184_v62 = vadd.f32 %v1183_v61, %v1170_v60  ;;  %v3222_v60 = vld [vmem:[#allocation6] ss:$0 sm:$0xff]  ;;  %1771 = vmatpush.bf16.msrb.mxu3 %v2876_v28  ;;  %v3223_v28 = vld [vmem:[%s3778_s8] ss:$0 sm:$0xff] }
 0x12e   :  { %1639 = vmatpush.bf16.msrb.mxu1 %v3164_v10  ;;  %v2847_v10 = vld [vmem:[#allocation9 + $0x30] sm:$0xf] }
 0x12f   :  { %v1189_v0 = vmax.f32 %v1184_v62, 0.0 }
 0x130   :  { %1626 = vmatpush.bf16.msrb.mxu0 %v3155_v55  ;;  %1759 = vmatpush.bf16.msrb.mxu2 %v2856_v40  ;;  %v3174_v55 = vld [vmem:[#allocation9 + $0x34] sm:$0xf0] }
 0x131   :  { %v1191_v2 = vpack.c.bf16 %v1189_v0, %v1187_v63  ;;  %1772 = vmatpush.bf16.msrb.mxu3 %v2868_v34  ;;  %v3194_v40 = vld [vmem:[#allocation10 + $0x58] sm:$0xff] }
 0x132   :  { %1640 = vmatpush.bf16.msrb.mxu1 %v3163_v56  ;;  %v3173_v56 = vld [vmem:[#allocation9 + $0x34] sm:$0xf] }
 0x133   :  { %1346 = vmatmul.bf16.vlgmr.msra.gmra.mxu1 %v1191_v2 }
 0x134   :  { %1627 = vmatpush.bf16.msrb.mxu0 %v3154_v7 }
 0x135   :  { %1773 = vmatpush.bf16.msrb.mxu3 %v2860_v41  ;;  %v3185_v41 = vld [vmem:[#allocation10 + $0x10] sm:$0xff] }
 0x136   :  { %1641 = vmatpush.bf16.msrb.mxu1 %v3162_v8  ;;  %v2833_v8 = vld [vmem:[#allocation9 + $0x18] sm:$0xf0] }
 0x138   :  { %1628 = vmatpush.bf16.msrb.mxu0 %v3153_v9 }
 0x13a   :  { %1642 = vmatpush.bf16.msrb.mxu1 %v3161_v11  ;;  %v2823_v11 = vld [vmem:[#allocation9] sm:$0xf] }
 0x13c   :  { %1629 = vmatpush.bf16.msrb.mxu0 %v3152_v12  ;;  %v3168_v12 = vld [vmem:[#allocation9 + $0x4] sm:$0xf0] }
 0x13e   :  { %1643 = vmatpush.bf16.msrb.mxu1 %v3160_v13  ;;  %v3167_v13 = vld [vmem:[#allocation9 + $0x4] sm:$0xf] }
 0x140   :  { %1630 = vmatpush.bf16.msrb.mxu0 %v3151_v14  ;;  %v2824_v14 = vor.u32 %v3168_v12, %v2823_v11 }
 0x142   :  { %1644 = vmatpush.bf16.msrb.mxu1 %v3159_v15  ;;  %v2825_v15 = vld [vmem:[#allocation9 + $0x8] sm:$0xf0] }
 0x143   :  { %v2828_v16 = vor.u32 %v3167_v13, %v2825_v15 }
 0x144   :  { %1922 = vmatpush.bf16.msra.mxu0 %v3190_v18 }
 0x146   :  { %1936 = vmatpush.bf16.msra.mxu1 %v3198_v19  ;;  %v3225_v19 = vld [vmem:[%s3784_s14] ss:$0 sm:$0xff] }
 0x148   :  { %1923 = vmatpush.bf16.msra.mxu0 %v3189_v20 }
 0x14a   :  { %1937 = vmatpush.bf16.msra.mxu1 %v3197_v21 }
 0x14c   :  { %1924 = vmatpush.bf16.msra.mxu0 %v3188_v22 }
 0x14e   :  { %1938 = vmatpush.bf16.msra.mxu1 %v3196_v23 }
 0x150   :  { %1925 = vmatpush.bf16.msra.mxu0 %v3187_v24 }
 0x152   :  { %1939 = vmatpush.bf16.msra.mxu1 %v3195_v25 }
 0x154   :  { %1926 = vmatpush.bf16.msra.mxu0 %v3186_v38 }
 0x156   :  { %1940 = vmatpush.bf16.msra.mxu1 %v3194_v40 }
 0x158   :  { %1927 = vmatpush.bf16.msra.mxu0 %v3185_v41 }
 0x15a   :  { %1941 = vmatpush.bf16.msra.mxu1 %v3193_v42 }
 0x170   :  { %v1333_v57 = vpop.f32.mrf.mxu0 }
 0x171   :  { %v1334_v62 = vadd.f32 %v3222_v60, %v1333_v57  ;;  %v2848_v57 = vor.u32 %v3174_v55, %v2847_v10 }
 0x173   :  { %1760 = vmatpush.bf16.msrb.mxu2 %v2848_v57 }
 0x178   :  { %v1335_v61 = vpop.f32.mrf.mxu0 }
 0x179   :  { %v1336_v63 = vadd.f32 %v3222_v60, %v1335_v61  ;;  %v2839_v61 = vld [vmem:[#allocation9 + $0x20] sm:$0xf] }
 0x1b0   :  { %v1347_v59 = vpop.f32.mrf.mxu1 }
 0x1b1   :  { %v1348_v0 = vadd.f32 %v1347_v59, %v1334_v62  ;;  %v2849_v59 = vld [vmem:[#allocation9 + $0x38] sm:$0xf0]  ;;  %v3172_v62 = vld [vmem:[#allocation9 + $0x24] sm:$0xf0] }
 0x1b2   :  { %v2852_v60 = vor.u32 %v3173_v56, %v2849_v59 }
 0x1b3   :  { %v1352_v4 = vmax.f32 %v1348_v0, 0.0  ;;  %v2840_v0 = vor.u32 %v3172_v62, %v2839_v61 }
 0x1b4   :  { %1774 = vmatpush.bf16.msrb.mxu3 %v2852_v60 }
 0x1b5   :  { %1761 = vmatpush.bf16.msrb.mxu2 %v2840_v0  ;;  %v3202_v0 = vld [vmem:[%s3783_s13 + $0x18] sm:$0xff] }
 0x1b8   :  { %v1349_v2 = vpop.f32.mrf.mxu1 }
 0x1b9   :  { %v1350_v3 = vadd.f32 %v1349_v2, %v1336_v63  ;;  %v3171_v63 = vld [vmem:[#allocation9 + $0x24] sm:$0xf]  ;;  %v2841_v2 = vld [vmem:[#allocation9 + $0x28] sm:$0xf0] }
 0x1bb   :  { %v1353_v5 = vmax.f32 %v1350_v3, 0.0  ;;  %v2844_v3 = vor.u32 %v3171_v63, %v2841_v2  ;;  %v3201_v2 = vld [vmem:[%s3783_s13 + $0x10] sm:$0xff] }
 0x1bd   :  { %v1354_v6 = vpack.c.bf16 %v1353_v5, %v1352_v4  ;;  %1775 = vmatpush.bf16.msrb.mxu3 %v2844_v3  ;;  %v2831_v4 = vld [vmem:[#allocation9 + $0x10] sm:$0xf]  ;;  %v3170_v5 = vld [vmem:[#allocation9 + $0x14] sm:$0xf0]  ;;  %v3200_v3 = vld [vmem:[%s3783_s13 + $0x8] sm:$0xff] }
 0x1be   :  { %v2832_v7 = vor.u32 %v3170_v5, %v2831_v4  ;;  %v3199_v4 = vld [vmem:[%s3783_s13] sm:$0xff] }
 0x1bf   :  { %1465 = vmatmul.bf16.vlgmr.msra.gmra.mxu2 %v1354_v6  ;;  %1479 = vmatmul.bf16.vlgmr.msra.gmra.mxu3 %v1354_v6  ;;  %v3169_v6 = vld [vmem:[#allocation9 + $0x14] sm:$0xf] }
 0x1c0   :  { %v2836_v9 = vor.u32 %v3169_v6, %v2833_v8  ;;  %1762 = vmatpush.bf16.msrb.mxu2 %v2832_v7  ;;  %v3224_v7 = vld [vmem:[%s3782_s12] ss:$0 sm:$0xff] }
 0x1c2   :  { %1776 = vmatpush.bf16.msrb.mxu3 %v2836_v9 }
 0x1c4   :  { %1763 = vmatpush.bf16.msrb.mxu2 %v2824_v14 }
 0x1c6   :  { %1777 = vmatpush.bf16.msrb.mxu3 %v2828_v16 }
 0x242   :  { %v1466_v45 = vpop.f32.mrf.mxu2  ;;  %v1480_v46 = vpop.f32.mrf.mxu3 }
 0x243   :  { %v1467_v39 = vadd.f32 %v1466_v45, %v1373_v48  ;;  %v1481_v43 = vadd.f32 %v1480_v46, %v1374_v1  ;;  %v3184_v45 = vld [vmem:[#allocation10 + $0x8] sm:$0xff] }
 0x244   :  { %v3192_v46 = vld [vmem:[#allocation10 + $0x48] sm:$0xff]  ;;  %1928 = vmatpush.bf16.msra.mxu0 %v3184_v45 }
 0x245   :  { %v1485_v51 = vmax.f32 %v1467_v39, 0.0  ;;  %v1486_v52 = vmax.f32 %v1481_v43, 0.0  ;;  %1942 = vmatpush.bf16.msra.mxu1 %v3192_v46  ;;  %v3206_v39 = vld [vmem:[%s3783_s13 + $0x38] sm:$0xff]  ;;  %v3205_v43 = vld [vmem:[%s3783_s13 + $0x30] sm:$0xff] }
 0x246   :  { %2021 = vmatpush.bf16.msra.mxu2 %v3206_v39 }
 0x24a   :  { %v1468_v44 = vpop.f32.mrf.mxu2  ;;  %v1482_v47 = vpop.f32.mrf.mxu3  ;;  %2022 = vmatpush.bf16.msra.mxu2 %v3205_v43 }
 0x24b   :  { %v1469_v49 = vadd.f32 %v1468_v44, %v1373_v48  ;;  %v1483_v50 = vadd.f32 %v1482_v47, %v1374_v1  ;;  %v3183_v48 = vld [vmem:[#allocation10] sm:$0xff] }
 0x24c   :  { %v3191_v1 = vld [vmem:[#allocation10 + $0x40] sm:$0xff]  ;;  %1929 = vmatpush.bf16.msra.mxu0 %v3183_v48 }
 0x24d   :  { %v1487_v53 = vmax.f32 %v1469_v49, 0.0  ;;  %v1488_v58 = vmax.f32 %v1483_v50, 0.0  ;;  %1943 = vmatpush.bf16.msra.mxu1 %v3191_v1  ;;  %v3204_v44 = vld [vmem:[%s3783_s13 + $0x28] sm:$0xff]  ;;  %v3203_v47 = vld [vmem:[%s3783_s13 + $0x20] sm:$0xff] }
 0x24e   :  { %2023 = vmatpush.bf16.msra.mxu2 %v3204_v44  ;;  %v1670_v49 = vld [vmem:[%s3780_s10] sm:$0x3] }
 0x24f   :  { %v1489_v17 = vpack.c.bf16 %v1487_v53, %v1485_v51  ;;  %v1490_v54 = vpack.c.bf16 %v1488_v58, %v1486_v52  ;;  %v1672_v52 = vperm.slane %v1670_v49, 0  ;;  %v1673_v53 = vperm.slane %v1670_v49, 1 }
 0x251   :  { %1631 = vmatmul.bf16.vlgmr.msrb.gmra.mxu0 %v1489_v17  ;;  %1645 = vmatmul.bf16.vlgmr.msrb.gmra.mxu1 %v1490_v54 }
 0x252   :  { %2024 = vmatpush.bf16.msra.mxu2 %v3203_v47 }
 0x256   :  { %2025 = vmatpush.bf16.msra.mxu2 %v3202_v0 }
 0x25a   :  { %2026 = vmatpush.bf16.msra.mxu2 %v3201_v2 }
 0x25e   :  { %2027 = vmatpush.bf16.msra.mxu2 %v3200_v3 }
 0x262   :  { %2028 = vmatpush.bf16.msra.mxu2 %v3199_v4 }
 0x2ce   :  { %v1632_v26 = vpop.f32.mrf.mxu0  ;;  %v1646_v27 = vpop.f32.mrf.mxu1 }
 0x2cf   :  { %v1633_v29 = vadd.f32 %v3223_v28, %v1632_v26 }
 0x2d1   :  { %v1647_v31 = vadd.f32 %v1646_v27, %v1633_v29 }
 0x2d3   :  { %v1651_v35 = vmax.f32 %v1647_v31, 0.0 }
 0x2d6   :  { %v1634_v30 = vpop.f32.mrf.mxu0  ;;  %v1648_v33 = vpop.f32.mrf.mxu1 }
 0x2d7   :  { %v1635_v32 = vadd.f32 %v3223_v28, %v1634_v30 }
 0x2d9   :  { %v1649_v34 = vadd.f32 %v1648_v33, %v1635_v32 }
 0x2db   :  { %v1652_v36 = vmax.f32 %v1649_v34, 0.0 }
 0x2dd   :  { %v1653_v37 = vpack.c.bf16 %v1652_v36, %v1651_v35 }
 0x2df   :  { %1764 = vmatmul.bf16.vlgmr.msrb.gmra.mxu2 %v1653_v37  ;;  %1778 = vmatmul.bf16.vlgmr.msrb.gmra.mxu3 %v1653_v37 }
 0x362   :  { %v1765_v50 = vpop.f32.mrf.mxu2  ;;  %v1779_v51 = vpop.f32.mrf.mxu3 }
 0x363   :  { %v1766_v58 = vadd.f32 %v1765_v50, %v1672_v52  ;;  %v1780_v17 = vadd.f32 %v1779_v51, %v1673_v53 }
 0x365   :  { %v1784_v57 = vmax.f32 %v1766_v58, 0.0  ;;  %v1785_v59 = vmax.f32 %v1780_v17, 0.0 }
 0x36a   :  { %v1767_v54 = vpop.f32.mrf.mxu2  ;;  %v1781_v10 = vpop.f32.mrf.mxu3 }
 0x36b   :  { %v1768_v55 = vadd.f32 %v1767_v54, %v1672_v52  ;;  %v1782_v56 = vadd.f32 %v1781_v10, %v1673_v53 }
 0x36d   :  { %v1786_v60 = vmax.f32 %v1768_v55, 0.0  ;;  %v1787_v61 = vmax.f32 %v1782_v56, 0.0 }
 0x36f   :  { %v1788_v62 = vpack.c.bf16 %v1786_v60, %v1784_v57  ;;  %v1789_v63 = vpack.c.bf16 %v1787_v61, %v1785_v59 }
 0x371   :  { %1930 = vmatmul.bf16.vlgmr.msra.gmra.mxu0 %v1788_v62  ;;  %1944 = vmatmul.bf16.vlgmr.msra.gmra.mxu1 %v1789_v63 }
 0x3ee   :  { %v1931_v5 = vpop.f32.mrf.mxu0  ;;  %v1945_v6 = vpop.f32.mrf.mxu1 }
 0x3ef   :  { %v1932_v8 = vadd.f32 %v3224_v7, %v1931_v5 }
 0x3f1   :  { %v1946_v11 = vadd.f32 %v1945_v6, %v1932_v8 }
 0x3f3   :  { %v1950_v15 = vmax.f32 %v1946_v11, 0.0 }
 0x3f6   :  { %v1933_v9 = vpop.f32.mrf.mxu0  ;;  %v1947_v13 = vpop.f32.mrf.mxu1 }
 0x3f7   :  { %v1934_v12 = vadd.f32 %v3224_v7, %v1933_v9 }
 0x3f9   :  { %v1948_v14 = vadd.f32 %v1947_v13, %v1934_v12 }
 0x3fb   :  { %v1951_v16 = vmax.f32 %v1948_v14, 0.0 }
 0x3fd   :  { %v1952_v18 = vpack.c.bf16 %v1951_v16, %v1950_v15 }
 0x3ff   :  { %2029 = vmatmul.bf16.vlgmr.msra.gmra.mxu2 %v1952_v18 }
 0x482   :  { %v2030_v20 = vpop.f32.mrf.mxu2 }
 0x483   :  { %v2031_v21 = vadd.f32 %v3225_v19, %v2030_v20 }
 0x485   :  { %v2981_v22 = vmul.f32 -1.442695, %v2031_v21 }
 0x487   :  { %3226 = vpow2.f32 %v2981_v22 }
 0x48a   :  { %v2032_v23 = vpop.f32.mrf.mxu2 }
 0x48b   :  { %v2033_v24 = vadd.f32 %v3225_v19, %v2032_v23 }
 0x48d   :  { %v3227_v25 = vpop.eup %3226  ;;  %v2982_v26 = vmul.f32 -1.442695, %v2033_v24 }
 0x48e   :  { %v2041_v27 = vadd.f32 1.0, %v3227_v25 }
 0x48f   :  { %3228 = vpow2.f32 %v2982_v26 }
 0x490   :  { %3230 = vrcp.f32 %v2041_v27  ;;  %vm2048_vm1 = vweird.f32 %v2041_v27  ;;  %v2054_v38 = vand.u32 2147483648, %v2041_v27  ;;  %v2052_v41 = vand.u32 2147483647, %v2041_v27 }
 0x492   :  { %v2055_v1 = vor.u32 1.1754944e-38, %v2054_v38  ;;  %vm2053_vm6 = vcmp.eq.f32.partialorder %v2052_v41, 8.507059e+37 }
 0x495   :  { %v3229_v28 = vpop.eup %3228 }
 0x496   :  { %v3231_v29 = vpop.eup %3230  ;;  %v2042_v30 = vadd.f32 1.0, %v3229_v28 }
 0x497   :  { %v2044_v31 = vmul.f32 %v3231_v29, %v2041_v27  ;;  %vm2049_vm0 = vweird.f32 %v3231_v29 }
 0x498   :  { %3232 = vrcp.f32 %v2042_v30  ;;  %v2069_v40 = vand.u32 2147483648, %v2042_v30  ;;  %v2067_v45 = vand.u32 2147483647, %v2042_v30  ;;  %vm2050_vm3 = vmor %vm2048_vm1, %vm2049_vm0  ;;  %vm2063_vm4 = vweird.f32 %v2042_v30 }
 0x499   :  { %v2045_v32 = vsub.f32 1.0, %v2044_v31 }
 0x49a   :  { %v2070_v39 = vor.u32 1.1754944e-38, %v2069_v40  ;;  %vm2068_vm7 = vcmp.eq.f32.partialorder %v2067_v45, 8.507059e+37 }
 0x49b   :  { %v2046_v33 = vmul.f32 %v3231_v29, %v2045_v32 }
 0x49d   :  { %v2047_v36 = vadd.f32 %v3231_v29, %v2046_v33 }
 0x49e   :  { %v3233_v34 = vpop.eup %3232 }
 0x49f   :  { %v2059_v35 = vmul.f32 %v3233_v34, %v2042_v30  ;;  %vm2064_vm2 = vweird.f32 %v3233_v34  ;;  %v2051_v46 = vsel %vm2050_vm3, %v3231_v29, %v2047_v36 }
 0x4a0   :  { %vm2065_vm5 = vmor %vm2063_vm4, %vm2064_vm2  ;;  %v2056_v44 = vsel %vm2053_vm6, %v2055_v1, %v2051_v46 }
 0x4a1   :  { %v2060_v37 = vsub.f32 1.0, %v2059_v35 }
 0x4a3   :  { %v2061_v42 = vmul.f32 %v3233_v34, %v2060_v37 }
 0x4a5   :  { %v2062_v48 = vadd.f32 %v3233_v34, %v2061_v42 }
 0x4a7   :  { %v2066_v43 = vsel %vm2065_vm5, %v3233_v34, %v2062_v48 }
 0x4a8   :  { %v2071_v47 = vsel %vm2068_vm7, %v2070_v39, %v2066_v43 }
 0x4a9   :  { %v3210_v49 = vpack.c.bf16 %v2071_v47, %v2056_v44 }
 0x4ab   :  { %3211 = vst [vmem:[%s3785_s15] sm:$0xff] %v3210_v49  }
 0x4ac   :  { %2081 = vsyncpa [#allocation3], 1 }
 0x4ad   :  { %2082 = vsyncpa [#allocation5], 1 }
 0x4ae   :  { %2083 = vsyncpa [#allocation8], 1 }
 0x4af   :  { %2084 = vsyncpa [#allocation11], 1 }

</bundles_post_ra>
